<compile_context>
chip_gen: v7x
topology: tpu7x:2x2x1
jax: 0.10.0
libtpu: 0.0.40
codegen_flags: <defaults>
</compile_context>

<pallas_src>
import functools

import jax
import jax.numpy as jnp
from jax.experimental import pallas as pl
from jax.experimental.pallas import tpu as pltpu


def _window_attention_kernel(x_ref, wqkv_ref, bias_ref, wproj_ref, bproj_ref,
                             o_ref, *, tokens, num_heads, compute_dtype):
    rows, C = x_ref.shape            # rows = Bt * N (token-major window tile)
    N = tokens
    H = num_heads
    hd = C // H
    Bt = rows // N

    # Single cast of the x tile (previously repeated once per head).
    x2d = x_ref[...].astype(compute_dtype)                        # (rows, C)

    # Fused QKV projection: one lane-dense (rows, 3C)-wide MXU matmul with f32
    # accumulation.  The softmax scale is pre-folded into the Q weight columns.
    qkv = jnp.dot(x2d, wqkv_ref[...], preferred_element_type=jnp.float32)

    # Per-head attention (static, unrolled loop; the big projections stay fused).
    ctx_heads = []
    for h in range(H):
        lo = h * hd
        q = qkv[:, 0 * C + lo:0 * C + lo + hd].reshape(Bt, N, hd).astype(compute_dtype)
        k = qkv[:, 1 * C + lo:1 * C + lo + hd].reshape(Bt, N, hd).astype(compute_dtype)
        v = qkv[:, 2 * C + lo:2 * C + lo + hd].reshape(Bt, N, hd).astype(compute_dtype)

        # Scores contract on head_dim directly (no explicit K transpose in VMEM).
        s = jnp.einsum("bnd,bmd->bnm", q, k,
                       preferred_element_type=jnp.float32)        # (Bt, N, N) f32
        s = s + bias_ref[h][None]                                 # (1, N, N) broadcast

        # Numerically-stable f32 softmax; reciprocal on the (idle) EUP.
        s = s - jnp.max(s, axis=-1, keepdims=True)
        p = jnp.exp(s)
        p = p * pl.reciprocal(jnp.sum(p, axis=-1, keepdims=True), approx=True)

        ctx = jnp.einsum("bnm,bmd->bnd", p.astype(compute_dtype), v,
                         preferred_element_type=jnp.float32)      # (Bt, N, hd) f32
        ctx_heads.append(ctx.reshape(rows, hd))

    # Head-major concat == (attn @ v).transpose(1, 2).reshape(B, N, C).
    ctx = jnp.concatenate(ctx_heads, axis=-1).astype(compute_dtype)   # (rows, C)

    # Fused output projection across ALL heads: one (rows, C) x (C, C) matmul.
    out = jnp.dot(ctx, wproj_ref[...], preferred_element_type=jnp.float32)
    o_ref[...] = (out + bproj_ref[...]).astype(o_ref.dtype)


def _choose_block_windows(B, N, C, H, cd_size, out_size,
                          vmem_budget_bytes=20 << 20, max_block=1024):
    """Pick how many windows (Bt) to process per grid step.

    The default 20 MiB budget is sized for v7x (64 MiB physical VMEM per TC,
    leaving room for the double-buffered x/out blocks, the resident weights /
    bias and the softmax temporaries); v6e (128 MiB) could use a larger budget.
    Bt must keep the (Bt*N, C) block second-minor dim a multiple of 8 (or the
    full array), and we prefer >= 2 grid steps so both v7x TensorCores work.
    """
    per_window = (N * C * (2 * cd_size + 2 * out_size)   # pipelined x/out blocks
                  + 8 * N * C * 4                        # qkv / ctx / out f32 temps
                  + 6 * N * N * 4                        # per-head scores / softmax
                  + 4 * N * 128 * 4)                     # lane padding of (N, hd) tiles
    cap = max(1, min(max_block, vmem_budget_bytes // per_window, B))

    cands = [d for d in range(1, B + 1)
             if B % d == 0 and ((d * N) % 8 == 0 or d == B)]
    fitting = [d for d in cands if d <= cap]
    bt = max(fitting) if fitting else min(cands)
    # Prefer >= 2 grid steps along the "parallel" window axis (v7x has 2 TCs).
    if B // bt < 2:
        two_step = [d for d in fitting if B // d >= 2]
        if two_step:
            bt = max(two_step)
    return bt


def window_attention_pallas(x, w_qkv_t, rel_pos_bias, w_proj_t, b_proj, *,
                            num_heads, block_windows=None, mxu_dtype=None):
    """x: (B, N, C); w_qkv_t: (C, 3C); rel_pos_bias: (H, N, N);
       w_proj_t: (C, C); b_proj: (1, C).  mask=None path only.

    mxu_dtype: dtype of the matmul *operands* (accumulation and softmax stay
    f32).  Defaults to bfloat16 when x is float32 (MXU-native on v5e/v6e/v7x)."""
    B, N, C = x.shape
    H = num_heads
    hd = C // H
    scale = hd ** -0.5
    out_dtype = x.dtype

    if mxu_dtype is None:
        compute_dtype = jnp.bfloat16 if x.dtype == jnp.float32 else x.dtype
    else:
        compute_dtype = jnp.dtype(mxu_dtype)

    # Fold the softmax scale into the Q columns of the fused QKV weight (one-time
    # wrapper-side op); cast only MXU operands, keep bias / proj-bias in f32.
    wqkv = jnp.concatenate([w_qkv_t[:, :C] * scale, w_qkv_t[:, C:]], axis=1)
    wqkv = wqkv.astype(compute_dtype)
    wproj = w_proj_t.astype(compute_dtype)
    bias = rel_pos_bias.astype(jnp.float32)
    bproj = b_proj.astype(jnp.float32)

    # Lane-dense 2-D slab layout: (B*N, C) rows, blocked by whole windows.
    x_in = x.reshape(B * N, C).astype(compute_dtype)

    if block_windows is None:
        block_windows = _choose_block_windows(
            B, N, C, H,
            jnp.dtype(compute_dtype).itemsize, jnp.dtype(out_dtype).itemsize)
    Bt = block_windows
    assert B % Bt == 0, "block_windows must divide the number of windows"
    assert (Bt * N) % 8 == 0 or Bt == B, (
        "block row count must be a multiple of 8 (or cover all windows)")
    nb = B // Bt

    kernel = functools.partial(
        _window_attention_kernel, tokens=N, num_heads=H,
        compute_dtype=compute_dtype)

    out2d = pl.pallas_call(
        kernel,
        out_shape=jax.ShapeDtypeStruct((B * N, C), out_dtype),
        grid_spec=pltpu.PrefetchScalarGridSpec(
            num_scalar_prefetch=0,
            grid=(nb,),
            in_specs=[
                pl.BlockSpec((Bt * N, C), lambda b: (b, 0)),      # x window tile
                pl.BlockSpec((C, 3 * C), lambda b: (0, 0)),       # fused Wqkv (resident)
                pl.BlockSpec((H, N, N), lambda b: (0, 0, 0)),     # rel-pos bias (resident)
                pl.BlockSpec((C, C), lambda b: (0, 0)),           # Wproj (resident)
                pl.BlockSpec((1, C), lambda b: (0, 0)),           # proj bias (resident)
            ],
            out_specs=pl.BlockSpec((Bt * N, C), lambda b: (b, 0)),
        ),
        compiler_params=pltpu.CompilerParams(
            dimension_semantics=("parallel",),
            vmem_limit_bytes=48 * 1024 * 1024),
    )(x_in, wqkv, bias, wproj, bproj)

    return out2d.reshape(B, N, C)


def build_relative_position_bias(table, window_size, num_heads):
    """table: ((2*ws-1)**2, H) -> (H, N, N) bias, replicating the PyTorch indexing."""
    ws = window_size
    coords_h = jnp.arange(ws)
    coords_w = jnp.arange(ws)
    coords = jnp.stack(jnp.meshgrid(coords_h, coords_w, indexing="ij"))        # (2, ws, ws)
    coords_flatten = coords.reshape(2, -1)                                     # (2, N)
    relative_coords = coords_flatten[:, :, None] - coords_flatten[:, None, :]  # (2, N, N)
    relative_coords = jnp.transpose(relative_coords, (1, 2, 0))                # (N, N, 2)
    relative_coords = relative_coords.at[:, :, 0].add(ws - 1)
    relative_coords = relative_coords.at[:, :, 1].add(ws - 1)
    relative_coords = relative_coords.at[:, :, 0].multiply(2 * ws - 1)
    relative_position_index = relative_coords.sum(-1)                          # (N, N)

    N = ws * ws
    bias = table[relative_position_index.reshape(-1)].reshape(N, N, num_heads)
    return jnp.transpose(bias, (2, 0, 1)).astype(jnp.float32)                  # (H, N, N)


def window_attention_reference(x, w_qkv_t, rel_pos_bias, w_proj_t, b_proj,
                               *, num_heads):
    """Pure-JAX reference mirroring the PyTorch forward (mask=None)."""
    B, N, C = x.shape
    hd = C // num_heads
    scale = hd ** -0.5
    qkv = x @ w_qkv_t                                       # (B, N, 3C)
    qkv = qkv.reshape(B, N, 3, num_heads, hd)
    qkv = jnp.transpose(qkv, (2, 0, 3, 1, 4))               # (3, B, H, N, hd)
    q, k, v = qkv[0], qkv[1], qkv[2]
    attn = jnp.einsum("bhnd,bhmd->bhnm", q, k) * scale
    attn = attn + rel_pos_bias[None]
    attn = jax.nn.softmax(attn, axis=-1)
    out = jnp.einsum("bhnm,bhmd->bhnd", attn, v)
    out = jnp.transpose(out, (0, 2, 1, 3)).reshape(B, N, C)
    return out @ w_proj_t + b_proj


if __name__ == "__main__":
    def run_case(num_windows, window_size, dim, num_heads, key):
        N = window_size * window_size
        kx, kqkv, ktab, kpw, kpb = jax.random.split(key, 5)

        x = jax.random.normal(kx, (num_windows, N, dim), dtype=jnp.float32)
        w_qkv_t = 0.05 * jax.random.normal(kqkv, (dim, 3 * dim), dtype=jnp.float32)
        rel_table = 0.05 * jax.random.normal(
            ktab, ((2 * window_size - 1) ** 2, num_heads), dtype=jnp.float32)
        w_proj_t = 0.05 * jax.random.normal(kpw, (dim, dim), dtype=jnp.float32)
        b_proj = 0.05 * jax.random.normal(kpb, (1, dim), dtype=jnp.float32)

        rel_pos_bias = build_relative_position_bias(rel_table, window_size, num_heads)
        ref = window_attention_reference(
            x, w_qkv_t, rel_pos_bias, w_proj_t, b_proj, num_heads=num_heads)

        # f32 MXU-operand path (tight check; approx reciprocal -> 2e-3 tolerance).
        out_f32 = window_attention_pallas(
            x, w_qkv_t, rel_pos_bias, w_proj_t, b_proj, num_heads=num_heads,
            mxu_dtype=jnp.float32)
        out_f32 = jax.block_until_ready(out_f32)
        assert out_f32.shape == (num_windows, N, dim)
        assert jnp.allclose(out_f32, ref, atol=2e-3, rtol=2e-3), (
            f"f32 mismatch vs reference (ws={window_size}, dim={dim})")

        # Default path: bf16 MXU operands (MXU-native on all generations),
        # f32 accumulation + f32 softmax.
        out_def = window_attention_pallas(
            x, w_qkv_t, rel_pos_bias, w_proj_t, b_proj, num_heads=num_heads)
        out_def = jax.block_until_ready(out_def)
        assert out_def.shape == (num_windows, N, dim)
        assert jnp.allclose(out_def, ref, atol=5e-2, rtol=5e-2), (
            f"bf16 mismatch vs reference (ws={window_size}, dim={dim})")

    key = jax.random.PRNGKey(0)
    k1, k2 = jax.random.split(key)
    # Small config: window_size=4 -> N=16, dim=32, 4 heads, 8 windows.
    run_case(8, 4, 32, 4, k1)
    # Block's default window_size=7 -> N=49 (non-multiple-of-8 token count).
    run_case(8, 7, 64, 4, k2)

    print("KERNEL_OK")
</pallas_src>

<mosaic_0001>
module attributes {stable_mosaic.version = 11 : i64} {
  func.func @_window_attention_kernel(%arg0: i32, %arg1: memref<64x32xf32, #tpu.memory_space<vmem>>, %arg2: memref<32x96xf32, #tpu.memory_space<vmem>>, %arg3: memref<4x16x16xf32, #tpu.memory_space<vmem>>, %arg4: memref<32x32xf32, #tpu.memory_space<vmem>>, %arg5: memref<1x32xf32, #tpu.memory_space<vmem>>, %arg6: memref<64x32xf32, #tpu.memory_space<vmem>>) attributes {dimension_semantics = [#tpu.dimension_semantics<parallel>], iteration_bounds = array<i64: 2>, scalar_prefetch = 0 : i64, scratch_operands = 0 : i64, tpu.core_type = #tpu.core_type<tc>, window_params = [{transform_indices = @transform_0, window_bounds = array<i64: 64, 32>}, {pipeline_mode = #tpu.pipeline_mode<synchronous>, transform_indices = @transform_1, window_bounds = array<i64: 32, 96>}, {pipeline_mode = #tpu.pipeline_mode<synchronous>, transform_indices = @transform_2, window_bounds = array<i64: 4, 16, 16>}, {pipeline_mode = #tpu.pipeline_mode<synchronous>, transform_indices = @transform_3, window_bounds = array<i64: 32, 32>}, {pipeline_mode = #tpu.pipeline_mode<synchronous>, transform_indices = @transform_4, window_bounds = array<i64: 1, 32>}, {transform_indices = @transform_5, window_bounds = array<i64: 64, 32>}]} {
    %c0 = arith.constant 0 : index
    %c0_0 = arith.constant 0 : index
    %0 = vector.load %arg1[%c0, %c0_0] : memref<64x32xf32, #tpu.memory_space<vmem>>, vector<64x32xf32>
    %c0_1 = arith.constant 0 : index
    %c0_2 = arith.constant 0 : index
    %1 = vector.load %arg2[%c0_1, %c0_2] : memref<32x96xf32, #tpu.memory_space<vmem>>, vector<32x96xf32>
    %cst = arith.constant dense<0.000000e+00> : vector<64x96xf32>
    %2 = tpu.matmul %0, %1, %cst {dimension_numbers = #tpu.dot_dimension_numbers<[1], [0], [0], [1], [0, 0, 1, 1], [], []>} : vector<64x32xf32>, vector<32x96xf32>, vector<64x96xf32> -> vector<64x96xf32>
    %3 = vector.extract_strided_slice %2 {offsets = [0, 0], sizes = [64, 8], strides = [1, 1]} : vector<64x96xf32> to vector<64x8xf32>
    %4 = vector.shape_cast %3 : vector<64x8xf32> to vector<4x16x8xf32>
    %5 = vector.extract_strided_slice %2 {offsets = [0, 32], sizes = [64, 8], strides = [1, 1]} : vector<64x96xf32> to vector<64x8xf32>
    %6 = vector.shape_cast %5 : vector<64x8xf32> to vector<4x16x8xf32>
    %7 = vector.extract_strided_slice %2 {offsets = [0, 64], sizes = [64, 8], strides = [1, 1]} : vector<64x96xf32> to vector<64x8xf32>
    %8 = vector.shape_cast %7 : vector<64x8xf32> to vector<4x16x8xf32>
    "tpu.trace_start"() <{level = 10 : i32, message = "bnd,bmd->bnm"}> : () -> ()
    %cst_3 = arith.constant dense<0.000000e+00> : vector<4x16x16xf32>
    %9 = tpu.matmul %4, %6, %cst_3 {dimension_numbers = #tpu.dot_dimension_numbers<[2], [2], [1], [1], [0, 0, 0, 1, 1, 1], [0], [0]>} : vector<4x16x8xf32>, vector<4x16x8xf32>, vector<4x16x16xf32> -> vector<4x16x16xf32>
    "tpu.trace_stop"() : () -> ()
    %c0_4 = arith.constant 0 : index
    %c0_5 = arith.constant 0 : index
    %c0_6 = arith.constant 0 : index
    %10 = vector.load %arg3[%c0_4, %c0_5, %c0_6] : memref<4x16x16xf32, #tpu.memory_space<vmem>>, vector<1x16x16xf32>
    %11 = vector.shape_cast %10 : vector<1x16x16xf32> to vector<16x16xf32>
    %12 = vector.shape_cast %11 : vector<16x16xf32> to vector<1x16x16xf32>
    %13 = vector.broadcast %12 : vector<1x16x16xf32> to vector<4x16x16xf32>
    %14 = arith.addf %9, %13 : vector<4x16x16xf32>
    %cst_7 = arith.constant dense<0xFF800000> : vector<4x16xf32>
    %15 = vector.multi_reduction <maximumf>, %14, %cst_7 [2] : vector<4x16x16xf32> to vector<4x16xf32>
    %16 = vector.shape_cast %15 : vector<4x16xf32> to vector<4x16x1xf32>
    %17 = vector.broadcast %16 : vector<4x16x1xf32> to vector<4x16x16xf32>
    %18 = arith.subf %14, %17 : vector<4x16x16xf32>
    %19 = math.exp %18 : vector<4x16x16xf32>
    %cst_8 = arith.constant dense<0.000000e+00> : vector<4x16xf32>
    %20 = vector.multi_reduction <add>, %19, %cst_8 [2] : vector<4x16x16xf32> to vector<4x16xf32>
    %21 = vector.shape_cast %20 : vector<4x16xf32> to vector<4x16x1xf32>
    %22 = tpu.reciprocal %21 {approx = true} : vector<4x16x1xf32> -> vector<4x16x1xf32>
    %23 = vector.broadcast %22 : vector<4x16x1xf32> to vector<4x16x16xf32>
    %24 = arith.mulf %19, %23 : vector<4x16x16xf32>
    "tpu.trace_start"() <{level = 10 : i32, message = "bnm,bmd->bnd"}> : () -> ()
    %cst_9 = arith.constant dense<0.000000e+00> : vector<4x16x8xf32>
    %25 = tpu.matmul %24, %8, %cst_9 {dimension_numbers = #tpu.dot_dimension_numbers<[2], [1], [1], [2], [0, 0, 0, 1, 1, 2], [0], [0]>} : vector<4x16x16xf32>, vector<4x16x8xf32>, vector<4x16x8xf32> -> vector<4x16x8xf32>
    "tpu.trace_stop"() : () -> ()
    %26 = vector.shape_cast %25 : vector<4x16x8xf32> to vector<64x8xf32>
    %27 = vector.extract_strided_slice %2 {offsets = [0, 8], sizes = [64, 8], strides = [1, 1]} : vector<64x96xf32> to vector<64x8xf32>
    %28 = vector.shape_cast %27 : vector<64x8xf32> to vector<4x16x8xf32>
    %29 = vector.extract_strided_slice %2 {offsets = [0, 40], sizes = [64, 8], strides = [1, 1]} : vector<64x96xf32> to vector<64x8xf32>
    %30 = vector.shape_cast %29 : vector<64x8xf32> to vector<4x16x8xf32>
    %31 = vector.extract_strided_slice %2 {offsets = [0, 72], sizes = [64, 8], strides = [1, 1]} : vector<64x96xf32> to vector<64x8xf32>
    %32 = vector.shape_cast %31 : vector<64x8xf32> to vector<4x16x8xf32>
    "tpu.trace_start"() <{level = 10 : i32, message = "bnd,bmd->bnm"}> : () -> ()
    %cst_10 = arith.constant dense<0.000000e+00> : vector<4x16x16xf32>
    %33 = tpu.matmul %28, %30, %cst_10 {dimension_numbers = #tpu.dot_dimension_numbers<[2], [2], [1], [1], [0, 0, 0, 1, 1, 1], [0], [0]>} : vector<4x16x8xf32>, vector<4x16x8xf32>, vector<4x16x16xf32> -> vector<4x16x16xf32>
    "tpu.trace_stop"() : () -> ()
    %c1 = arith.constant 1 : index
    %c0_11 = arith.constant 0 : index
    %c0_12 = arith.constant 0 : index
    %34 = vector.load %arg3[%c1, %c0_11, %c0_12] : memref<4x16x16xf32, #tpu.memory_space<vmem>>, vector<1x16x16xf32>
    %35 = vector.shape_cast %34 : vector<1x16x16xf32> to vector<16x16xf32>
    %36 = vector.shape_cast %35 : vector<16x16xf32> to vector<1x16x16xf32>
    %37 = vector.broadcast %36 : vector<1x16x16xf32> to vector<4x16x16xf32>
    %38 = arith.addf %33, %37 : vector<4x16x16xf32>
    %cst_13 = arith.constant dense<0xFF800000> : vector<4x16xf32>
    %39 = vector.multi_reduction <maximumf>, %38, %cst_13 [2] : vector<4x16x16xf32> to vector<4x16xf32>
    %40 = vector.shape_cast %39 : vector<4x16xf32> to vector<4x16x1xf32>
    %41 = vector.broadcast %40 : vector<4x16x1xf32> to vector<4x16x16xf32>
    %42 = arith.subf %38, %41 : vector<4x16x16xf32>
    %43 = math.exp %42 : vector<4x16x16xf32>
    %cst_14 = arith.constant dense<0.000000e+00> : vector<4x16xf32>
    %44 = vector.multi_reduction <add>, %43, %cst_14 [2] : vector<4x16x16xf32> to vector<4x16xf32>
    %45 = vector.shape_cast %44 : vector<4x16xf32> to vector<4x16x1xf32>
    %46 = tpu.reciprocal %45 {approx = true} : vector<4x16x1xf32> -> vector<4x16x1xf32>
    %47 = vector.broadcast %46 : vector<4x16x1xf32> to vector<4x16x16xf32>
    %48 = arith.mulf %43, %47 : vector<4x16x16xf32>
    "tpu.trace_start"() <{level = 10 : i32, message = "bnm,bmd->bnd"}> : () -> ()
    %cst_15 = arith.constant dense<0.000000e+00> : vector<4x16x8xf32>
    %49 = tpu.matmul %48, %32, %cst_15 {dimension_numbers = #tpu.dot_dimension_numbers<[2], [1], [1], [2], [0, 0, 0, 1, 1, 2], [0], [0]>} : vector<4x16x16xf32>, vector<4x16x8xf32>, vector<4x16x8xf32> -> vector<4x16x8xf32>
    "tpu.trace_stop"() : () -> ()
    %50 = vector.shape_cast %49 : vector<4x16x8xf32> to vector<64x8xf32>
    %51 = vector.extract_strided_slice %2 {offsets = [0, 16], sizes = [64, 8], strides = [1, 1]} : vector<64x96xf32> to vector<64x8xf32>
    %52 = vector.shape_cast %51 : vector<64x8xf32> to vector<4x16x8xf32>
    %53 = vector.extract_strided_slice %2 {offsets = [0, 48], sizes = [64, 8], strides = [1, 1]} : vector<64x96xf32> to vector<64x8xf32>
    %54 = vector.shape_cast %53 : vector<64x8xf32> to vector<4x16x8xf32>
    %55 = vector.extract_strided_slice %2 {offsets = [0, 80], sizes = [64, 8], strides = [1, 1]} : vector<64x96xf32> to vector<64x8xf32>
    %56 = vector.shape_cast %55 : vector<64x8xf32> to vector<4x16x8xf32>
    "tpu.trace_start"() <{level = 10 : i32, message = "bnd,bmd->bnm"}> : () -> ()
    %cst_16 = arith.constant dense<0.000000e+00> : vector<4x16x16xf32>
    %57 = tpu.matmul %52, %54, %cst_16 {dimension_numbers = #tpu.dot_dimension_numbers<[2], [2], [1], [1], [0, 0, 0, 1, 1, 1], [0], [0]>} : vector<4x16x8xf32>, vector<4x16x8xf32>, vector<4x16x16xf32> -> vector<4x16x16xf32>
    "tpu.trace_stop"() : () -> ()
    %c2 = arith.constant 2 : index
    %c0_17 = arith.constant 0 : index
    %c0_18 = arith.constant 0 : index
    %58 = vector.load %arg3[%c2, %c0_17, %c0_18] : memref<4x16x16xf32, #tpu.memory_space<vmem>>, vector<1x16x16xf32>
    %59 = vector.shape_cast %58 : vector<1x16x16xf32> to vector<16x16xf32>
    %60 = vector.shape_cast %59 : vector<16x16xf32> to vector<1x16x16xf32>
    %61 = vector.broadcast %60 : vector<1x16x16xf32> to vector<4x16x16xf32>
    %62 = arith.addf %57, %61 : vector<4x16x16xf32>
    %cst_19 = arith.constant dense<0xFF800000> : vector<4x16xf32>
    %63 = vector.multi_reduction <maximumf>, %62, %cst_19 [2] : vector<4x16x16xf32> to vector<4x16xf32>
    %64 = vector.shape_cast %63 : vector<4x16xf32> to vector<4x16x1xf32>
    %65 = vector.broadcast %64 : vector<4x16x1xf32> to vector<4x16x16xf32>
    %66 = arith.subf %62, %65 : vector<4x16x16xf32>
    %67 = math.exp %66 : vector<4x16x16xf32>
    %cst_20 = arith.constant dense<0.000000e+00> : vector<4x16xf32>
    %68 = vector.multi_reduction <add>, %67, %cst_20 [2] : vector<4x16x16xf32> to vector<4x16xf32>
    %69 = vector.shape_cast %68 : vector<4x16xf32> to vector<4x16x1xf32>
    %70 = tpu.reciprocal %69 {approx = true} : vector<4x16x1xf32> -> vector<4x16x1xf32>
    %71 = vector.broadcast %70 : vector<4x16x1xf32> to vector<4x16x16xf32>
    %72 = arith.mulf %67, %71 : vector<4x16x16xf32>
    "tpu.trace_start"() <{level = 10 : i32, message = "bnm,bmd->bnd"}> : () -> ()
    %cst_21 = arith.constant dense<0.000000e+00> : vector<4x16x8xf32>
    %73 = tpu.matmul %72, %56, %cst_21 {dimension_numbers = #tpu.dot_dimension_numbers<[2], [1], [1], [2], [0, 0, 0, 1, 1, 2], [0], [0]>} : vector<4x16x16xf32>, vector<4x16x8xf32>, vector<4x16x8xf32> -> vector<4x16x8xf32>
    "tpu.trace_stop"() : () -> ()
    %74 = vector.shape_cast %73 : vector<4x16x8xf32> to vector<64x8xf32>
    %75 = vector.extract_strided_slice %2 {offsets = [0, 24], sizes = [64, 8], strides = [1, 1]} : vector<64x96xf32> to vector<64x8xf32>
    %76 = vector.shape_cast %75 : vector<64x8xf32> to vector<4x16x8xf32>
    %77 = vector.extract_strided_slice %2 {offsets = [0, 56], sizes = [64, 8], strides = [1, 1]} : vector<64x96xf32> to vector<64x8xf32>
    %78 = vector.shape_cast %77 : vector<64x8xf32> to vector<4x16x8xf32>
    %79 = vector.extract_strided_slice %2 {offsets = [0, 88], sizes = [64, 8], strides = [1, 1]} : vector<64x96xf32> to vector<64x8xf32>
    %80 = vector.shape_cast %79 : vector<64x8xf32> to vector<4x16x8xf32>
    "tpu.trace_start"() <{level = 10 : i32, message = "bnd,bmd->bnm"}> : () -> ()
    %cst_22 = arith.constant dense<0.000000e+00> : vector<4x16x16xf32>
    %81 = tpu.matmul %76, %78, %cst_22 {dimension_numbers = #tpu.dot_dimension_numbers<[2], [2], [1], [1], [0, 0, 0, 1, 1, 1], [0], [0]>} : vector<4x16x8xf32>, vector<4x16x8xf32>, vector<4x16x16xf32> -> vector<4x16x16xf32>
    "tpu.trace_stop"() : () -> ()
    %c3 = arith.constant 3 : index
    %c0_23 = arith.constant 0 : index
    %c0_24 = arith.constant 0 : index
    %82 = vector.load %arg3[%c3, %c0_23, %c0_24] : memref<4x16x16xf32, #tpu.memory_space<vmem>>, vector<1x16x16xf32>
    %83 = vector.shape_cast %82 : vector<1x16x16xf32> to vector<16x16xf32>
    %84 = vector.shape_cast %83 : vector<16x16xf32> to vector<1x16x16xf32>
    %85 = vector.broadcast %84 : vector<1x16x16xf32> to vector<4x16x16xf32>
    %86 = arith.addf %81, %85 : vector<4x16x16xf32>
    %cst_25 = arith.constant dense<0xFF800000> : vector<4x16xf32>
    %87 = vector.multi_reduction <maximumf>, %86, %cst_25 [2] : vector<4x16x16xf32> to vector<4x16xf32>
    %88 = vector.shape_cast %87 : vector<4x16xf32> to vector<4x16x1xf32>
    %89 = vector.broadcast %88 : vector<4x16x1xf32> to vector<4x16x16xf32>
    %90 = arith.subf %86, %89 : vector<4x16x16xf32>
    %91 = math.exp %90 : vector<4x16x16xf32>
    %cst_26 = arith.constant dense<0.000000e+00> : vector<4x16xf32>
    %92 = vector.multi_reduction <add>, %91, %cst_26 [2] : vector<4x16x16xf32> to vector<4x16xf32>
    %93 = vector.shape_cast %92 : vector<4x16xf32> to vector<4x16x1xf32>
    %94 = tpu.reciprocal %93 {approx = true} : vector<4x16x1xf32> -> vector<4x16x1xf32>
    %95 = vector.broadcast %94 : vector<4x16x1xf32> to vector<4x16x16xf32>
    %96 = arith.mulf %91, %95 : vector<4x16x16xf32>
    "tpu.trace_start"() <{level = 10 : i32, message = "bnm,bmd->bnd"}> : () -> ()
    %cst_27 = arith.constant dense<0.000000e+00> : vector<4x16x8xf32>
    %97 = tpu.matmul %96, %80, %cst_27 {dimension_numbers = #tpu.dot_dimension_numbers<[2], [1], [1], [2], [0, 0, 0, 1, 1, 2], [0], [0]>} : vector<4x16x16xf32>, vector<4x16x8xf32>, vector<4x16x8xf32> -> vector<4x16x8xf32>
    "tpu.trace_stop"() : () -> ()
    %98 = vector.shape_cast %97 : vector<4x16x8xf32> to vector<64x8xf32>
    %99 = tpu.concatenate %26, %50, %74, %98 in 1 : vector<64x8xf32>, vector<64x8xf32>, vector<64x8xf32>, vector<64x8xf32> -> vector<64x32xf32>
    %c0_28 = arith.constant 0 : index
    %c0_29 = arith.constant 0 : index
    %100 = vector.load %arg4[%c0_28, %c0_29] : memref<32x32xf32, #tpu.memory_space<vmem>>, vector<32x32xf32>
    %cst_30 = arith.constant dense<0.000000e+00> : vector<64x32xf32>
    %101 = tpu.matmul %99, %100, %cst_30 {dimension_numbers = #tpu.dot_dimension_numbers<[1], [0], [0], [1], [0, 0, 1, 1], [], []>} : vector<64x32xf32>, vector<32x32xf32>, vector<64x32xf32> -> vector<64x32xf32>
    %c0_31 = arith.constant 0 : index
    %c0_32 = arith.constant 0 : index
    %102 = vector.load %arg5[%c0_31, %c0_32] : memref<1x32xf32, #tpu.memory_space<vmem>>, vector<1x32xf32>
    %103 = vector.broadcast %102 : vector<1x32xf32> to vector<64x32xf32>
    %104 = arith.addf %101, %103 : vector<64x32xf32>
    %c0_33 = arith.constant 0 : index
    %c0_34 = arith.constant 0 : index
    %105 = vector.load %arg6[%c0_33, %c0_34] : memref<64x32xf32, #tpu.memory_space<vmem>>, vector<64x32xf32>
    tpu.vector_store %arg6[%c0_33, %c0_34], %104 {strides = array<i32>} : memref<64x32xf32, #tpu.memory_space<vmem>>, vector<64x32xf32>,
    return
  }
  func.func @transform_0(%arg0: i32) -> (i32, i32) {
    %c0_i32 = arith.constant 0 : i32
    %c0_i32_0 = arith.constant 0 : i32
    return %arg0, %c0_i32 : i32, i32
  }
  func.func @transform_1(%arg0: i32) -> (i32, i32) {
    %c0_i32 = arith.constant 0 : i32
    %c0_i32_0 = arith.constant 0 : i32
    %c0_i32_1 = arith.constant 0 : i32
    return %c0_i32, %c0_i32_0 : i32, i32
  }
  func.func @transform_2(%arg0: i32) -> (i32, i32, i32) {
    %c0_i32 = arith.constant 0 : i32
    %c0_i32_0 = arith.constant 0 : i32
    %c0_i32_1 = arith.constant 0 : i32
    %c0_i32_2 = arith.constant 0 : i32
    return %c0_i32, %c0_i32_0, %c0_i32_1 : i32, i32, i32
  }
  func.func @transform_3(%arg0: i32) -> (i32, i32) {
    %c0_i32 = arith.constant 0 : i32
    %c0_i32_0 = arith.constant 0 : i32
    %c0_i32_1 = arith.constant 0 : i32
    return %c0_i32, %c0_i32_0 : i32, i32
  }
  func.func @transform_4(%arg0: i32) -> (i32, i32) {
    %c0_i32 = arith.constant 0 : i32
    %c0_i32_0 = arith.constant 0 : i32
    %c0_i32_1 = arith.constant 0 : i32
    return %c0_i32, %c0_i32_0 : i32, i32
  }
  func.func @transform_5(%arg0: i32) -> (i32, i32) {
    %c0_i32 = arith.constant 0 : i32
    %c0_i32_0 = arith.constant 0 : i32
    return %arg0, %c0_i32 : i32, i32
  }
}

</mosaic_0001>

<bundles_post_ra>
// kernel: tpu_custom_call.1
= control target key start
LH: loop header
LB: loop body
LE: loop exit
PB: predicated region body
PF: predicated region fallthrough
CT: control target
= control target key end

     0   :  { %s4988_s18 = smov 0   ;;  %s5716_s0 = inlined_call_operand.vmem [shape: f32[128,32], index: 0, kind: input, shape index: {}]   ;;  %s5717_s1 = inlined_call_operand.vmem [shape: f32[32,96], index: 1, kind: input, shape index: {}]   ;;  %s5718_s2 = inlined_call_operand.vmem [shape: f32[4,16,16], index: 2, kind: input, shape index: {}]   ;;  %s5719_s3 = inlined_call_operand.vmem [shape: f32[32,32], index: 3, kind: input, shape index: {}]   ;;  %s5720_s4 = inlined_call_operand.vmem [shape: f32[1,32], index: 4, kind: input, shape index: {}]   ;;  %s5721_s5 = inlined_call_operand.vmem [shape: f32[128,32], index: 5, kind: output, shape index: {}]  }
   0x1 LB: > { %s3900_s19 = sadd.s32 4294967295, %s4942_s18   ;;  %p3904_p0 = scmp.ge.s32.totalorder %s4942_s18, 1  ;;  %s4942_s18 = sphi %s4988_s18, %s15_s18  }
   0x2   : > { %p188_p1 = scmp.lt.s32.totalorder %s4942_s18, 3 }
   0x4   : > { %p189_p2 = pnand %p3904_p0, %p188_p1 }
   0x5   : > { %v236_v0 = vld [vmem:[%s5717_s1] sm:$0xff] (!%p189_p2)  ;;  %v237_v1 = vld [vmem:[%s5717_s1 + $0x8] sm:$0xff] (!%p189_p2)  ;;  %v238_v2 = vld [vmem:[%s5717_s1 + $0x10] sm:$0xff] (!%p189_p2)  ;;  %s3905_s26 = sshll.u32 (!%p189_p2), %s3900_s19, 3  ;;  %vm240_vm0 = vcmask (!%p189_p2), 261120   ;;  %vm378_vm1 = vcmask (!%p189_p2), 64512  }
   0x6   : > { %192 = sbr.rel (%p189_p2) target bundleno = 3335 (0xd07), region = 40  ;;  %v4446_v3 = vpack.c.bf16 (!%p189_p2), %v237_v1, %v236_v0  ;;  %v239_v4 = vld [vmem:[%s5717_s1 + $0x18] sm:$0xff] (!%p189_p2)  ;;  %p217_p3 = scmp.lt.s32.totalorder (!%p189_p2), %s3905_s26, 15  ;;  %vm5070_vm2 = vmpackc.low (!%p189_p2), %vm378_vm1, %vm378_vm1  ;;  %v371_v59 = vld [vmem:[%s5718_s2 + $0x8] sm:$0xff] (!%p189_p2)  ;;  %vm729_vm3 = vcmask (!%p189_p2), 130048   ;;  %vm3687_vm4 = vcmask (!%p189_p2), 195584  }
   0x7   : > { %v4450_v5 = vpack.c.bf16 (!%p189_p2), %v239_v4, %v238_v2  ;;  %s4944_s8 = smov (!%p189_p2), 96   ;;  %s4945_s9 = smov (!%p189_p2), 64   ;;  %v370_v62 = vld [vmem:[%s5718_s2] sm:$0xff] (!%p189_p2)  ;;  %v3994_v32 = vld [vmem:[%s5718_s2 + $0x38] sm:$0xff] (!%p189_p2) }
   0x8   : > { %4447 = vmatprep.subr.bf16.mxu0 (!%p189_p2), %v4446_v3  ;;  %4622 = vmatprep.subr.bf16.mxu1 (!%p189_p2), %v4446_v3  ;;  %s4946_s14 = smov (!%p189_p2), 88   ;;  %s4947_s15 = smov (!%p189_p2), 120  }
   0x9   : > { %4449 = vmatpush3.bf16.msra.mxu0 (!%p189_p2), %v4446_v3  ;;  %4624 = vmatpush3.bf16.msra.mxu1 (!%p189_p2), %v4446_v3  ;;  %s4948_s21 = smov (!%p189_p2), 56   ;;  %s4949_s22 = smov (!%p189_p2), 80  }
   0xa   : > { %4451 = vmatprep.subr.bf16.mxu0 (!%p189_p2), %v4450_v5  ;;  %4623 = vmatprep.subr.bf16.mxu1 (!%p189_p2), %v4450_v5  ;;  %s4950_s23 = smov (!%p189_p2), 112   ;;  %s4951_s30 = smov (!%p189_p2), 48  }
   0xb   : > { %s4952_s6 = smov (!%p189_p2), 72   ;;  %s4954_s12 = smov (!%p189_p2), 40  }
   0xc   : > { %s4955_s13 = smov (!%p189_p2), 8   ;;  %s4957_s24 = smov (!%p189_p2), 24  }
   0xd   : > { %s5725_s26 = smov (!%p217_p3, %s3905_s26), 15  ;;  %4453 = vmatpush3.bf16.msra.mxu0 %v4450_v5  ;;  %4625 = vmatpush3.bf16.msra.mxu1 %v4450_v5 }
   0xe   : > { %s3906_s29 = sshll.u32 %s5725_s26, 3 }
   0xf   : > { %s220_s7 = scalar_lea.vmem %s5716_s0, %s3906_s29 }
  0x10   : > { %v228_v6 = vld [vmem:[%s220_s7] sm:$0xff]  ;;  %v229_v8 = vld [vmem:[%s220_s7 + $0x8] sm:$0xff]  ;;  %v234_v10 = vld [vmem:[%s220_s7 + $0x30] sm:$0xff] }
  0x11   : > { %v232_v7 = vld [vmem:[%s220_s7 + $0x20] sm:$0xff]  ;;  %v233_v9 = vld [vmem:[%s220_s7 + $0x28] sm:$0xff]  ;;  %4190 = vmatprep.mubr.msk.f32.mxu0 %vm240_vm0, %v228_v6  ;;  %v230_v11 = vld [vmem:[%s220_s7 + $0x10] sm:$0xff] }
  0x12   : > { %4196 = vmatprep.mubr.msk.f32.mxu1 %vm240_vm0, %v232_v7  ;;  %4191 = vmatmul.mubr.msk.f32.vlgmr.msra.gmra.mrb[0].mxu0 %vm240_vm0, %v229_v8  ;;  %v235_v12 = vld [vmem:[%s220_s7 + $0x38] sm:$0xff] }
  0x13   : > { %4197 = vmatmul.mubr.msk.f32.vlgmr.msra.gmra.mrb[0].mxu1 %vm240_vm0, %v233_v9  ;;  %4193 = vmatprep.mubr.msk.f32.mxu0 %vm240_vm0, %v230_v11  ;;  %v231_v13 = vld [vmem:[%s220_s7 + $0x18] sm:$0xff]  ;;  %s4953_s7 = smov 104  }
  0x14   : > { %4199 = vmatprep.mubr.msk.f32.mxu1 %vm240_vm0, %v234_v10 }
  0x16   : > { %4194 = vmatmul.mubr.msk.f32.gmra.mrb[2].mxu0 %vm240_vm0, %v231_v13 }
  0x17   : > { %4200 = vmatmul.mubr.msk.f32.gmra.mrb[2].mxu1 %vm240_vm0, %v235_v12 }
  0xe5   : > { %v5024_v14 = vpop.f32.mrb[0].mxu0 }
  0xe6   : > { %v5026_v15 = vpop.f32.mrb[0].mxu1  ;;  %v5028_v16 = vpop.f32.mrb[1].mxu0 }
  0xe7   : > { %v5030_v17 = vpop.f32.mrb[1].mxu1  ;;  %v5040_v19 = vpack.i.bf16 %v5024_v14, %v5028_v16  ;;  %4206 = vmatprep.mubr.msk.f32.mxu1 %vm378_vm1, %v5028_v16 }
  0xe8   : > { %4220 = vmatprep.mubr.msk.f32.mxu0 %vm378_vm1, %v5030_v17  ;;  %v5036_v18 = vpack.i.bf16 %v5026_v15, %v5030_v17 }
  0xe9   : > { %4649 = vrot.lane.b32.xlu0 %v5040_v19, %s4944_s8  ;;  %v5048_v21 = vpop.f32.mrb[2].mxu0 }
  0xea   : > { %4659 = vrot.lane.b32.xlu1 %v5036_v18, %s4944_s8  ;;  %v5045_v20 = vpop.f32.mrb[2].mxu1  ;;  %v5052_v23 = vpop.f32.mrb[3].mxu0 }
  0xeb   : > { %v5050_v22 = vpop.f32.mrb[3].mxu1  ;;  %v5060_v25 = vpack.i.bf16 %v5048_v21, %v5052_v23 }
  0xec   : > { %v5056_v24 = vpack.i.bf16 %v5045_v20, %v5050_v22 }
  0xed   : > { %4654 = vrot.lane.b32.xlu0 %v5060_v25, %s4944_s8 }
  0xee   : > { %4664 = vrot.lane.b32.xlu1 %v5056_v24, %s4944_s8 }
  0xf1   : > { %4679 = vrot.lane.b32.xlu0 %v5060_v25, %s4945_s9 }
  0xf2   : > { %4669 = vrot.lane.b32.xlu1 %v5040_v19, %s4945_s9 }
  0xf6   : > { %4674 = vrot.lane.b32.xlu1 %v5036_v18, %s4945_s9 }
  0xfa   : > { %4684 = vrot.lane.b32.xlu1 %v5056_v24, %s4945_s9 }
 0x15b   : > { %v4650_v27 = vpop.permute.xlu0 %4649 }
 0x15c   : > { %v4660_v26 = vpop.permute.xlu1 %4659  ;;  %v4652_v30 = vunpack.i.h.bf16 %v4650_v27  ;;  %v4651_v31 = vunpack.i.l.bf16 %v4650_v27 }
 0x15d   : > { %v4662_v28 = vunpack.i.h.bf16 %v4660_v26  ;;  %v4661_v29 = vunpack.i.l.bf16 %v4660_v26 }
 0x15e   : > { %v4454_v34 = vpack.c.bf16 %v4652_v30, %v4651_v31 }
 0x15f   : > { %v4466_v33 = vpack.c.bf16 %v4662_v28, %v4661_v29  ;;  %v4655_v36 = vpop.permute.xlu0 %4654 }
 0x160   : > { %v4665_v35 = vpop.permute.xlu1 %4664  ;;  %4456 = vmatprep.subr.msk.bf16.mxu1 %vm5070_vm2, %v4454_v34  ;;  %v4657_v37 = vunpack.i.h.bf16 %v4655_v36  ;;  %v4656_v38 = vunpack.i.l.bf16 %v4655_v36 }
 0x161   : > { %4468 = vmatprep.subr.msk.bf16.mxu0 %vm5070_vm2, %v4466_v33  ;;  %4459 = vmatpush3.bf16.xpose.msk.msra.mxu1 %vm5070_vm2, %v4454_v34  ;;  %v4667_v40 = vunpack.i.h.bf16 %v4665_v35  ;;  %v4666_v41 = vunpack.i.l.bf16 %v4665_v35 }
 0x162   : > { %4471 = vmatpush3.bf16.xpose.msk.msra.mxu0 %vm5070_vm2, %v4466_v33  ;;  %v4460_v39 = vpack.c.bf16 %v4657_v37, %v4656_v38 }
 0x163   : > { %v4472_v46 = vpack.c.bf16 %v4667_v40, %v4666_v41  ;;  %v4680_v48 = vpop.permute.xlu0 %4679 }
 0x164   : > { %v4670_v42 = vpop.permute.xlu1 %4669  ;;  %4462 = vmatprep.subr.msk.bf16.mxu1 %vm5070_vm2, %v4460_v39  ;;  %v4682_v52 = vunpack.i.h.bf16 %v4680_v48  ;;  %v4681_v53 = vunpack.i.l.bf16 %v4680_v48 }
 0x165   : > { %v4672_v43 = vunpack.i.h.bf16 %v4670_v42  ;;  %v4671_v44 = vunpack.i.l.bf16 %v4670_v42 }
 0x166   : > { %v4482_v54 = vpack.c.bf16 %v4682_v52, %v4681_v53 }
 0x167   : > { %v4478_v45 = vpack.c.bf16 %v4672_v43, %v4671_v44 }
 0x168   : > { %v4675_v47 = vpop.permute.xlu1 %4674  ;;  %4207 = vmatmul.mubr.msk.f32.vlgmr.msra.gmra.mrb[4].mxu1 %vm378_vm1, %v5024_v14 }
 0x169   : > { %v4677_v49 = vunpack.i.h.bf16 %v4675_v47  ;;  %v4676_v50 = vunpack.i.l.bf16 %v4675_v47  ;;  %4221 = vmatmul.mubr.msk.f32.vlgmr.msra.gmra.mrb[4].mxu0 %vm378_vm1, %v5026_v15  ;;  %4479 = vmatprep.subr.bf16.mxu0 %v4478_v45 }
 0x16a   : > { %4465 = vmatpush3.bf16.xpose.msk.msra.mxu1 %vm5070_vm2, %v4460_v39  ;;  %4213 = vmatprep.mubr.msk.f32.mxu1 %vm378_vm1, %v5052_v23 }
 0x16b   : > { %4481 = vmatpush3.bf16.msra.mxu0 %v4478_v45  ;;  %v5092_v51 = vpack.c.bf16 %v4677_v49, %v4676_v50  ;;  %4474 = vmatprep.subr.msk.bf16.mxu1 %vm5070_vm2, %v4472_v46 }
 0x16c   : > { %v4685_v55 = vpop.permute.xlu1 %4684 }
 0x16d   : > { %4487 = vmatprep.subr.bf16.mxu0 %v5092_v51  ;;  %v4687_v56 = vunpack.i.h.bf16 %v4685_v55  ;;  %v4686_v57 = vunpack.i.l.bf16 %v4685_v55 }
 0x16f   : > { %v5103_v58 = vpack.c.bf16 %v4687_v56, %v4686_v57 }
 0x171   : > { %4214 = vmatmul.mubr.msk.f32.vlgmr.msra.gmra.mrb[6].mxu1 %vm378_vm1, %v5048_v21 }
 0x172   : > { %4477 = vmatpush3.bf16.xpose.msk.msra.mxu1 %vm5070_vm2, %v4472_v46  ;;  %4227 = vmatprep.mubr.msk.f32.mxu1 %vm378_vm1, %v5050_v22 }
 0x173   : > { %4483 = vmatprep.subr.bf16.mxu1 %v4482_v54 }
 0x179   : > { %4228 = vmatmul.mubr.msk.f32.vlgmr.msra.gmra.mrb[8].mxu1 %vm378_vm1, %v5045_v20 }
 0x17a   : > { %4485 = vmatpush3.bf16.msra.mxu1 %v4482_v54 }
 0x17b   : > { %4491 = vmatprep.subr.bf16.mxu1 %v5103_v58 }
 0x23b   : > { %v4208_v60 = vpop.f32.mrb[4].mxu1 }
 0x23c   : > { %v4222_v61 = vpop.f32.mrb[4].mxu0  ;;  %v459_v63 = vadd.f32 %v4208_v60, %v371_v59  ;;  %v453_v1 = vpop.f32.mrb[5].mxu1 }
 0x23d   : > { %v637_v0 = vadd.f32 %v4222_v61, %v371_v59  ;;  %v631_v2 = vpop.f32.mrb[5].mxu0  ;;  %v454_v3 = vadd.f32 %v453_v1, %v370_v62 }
 0x23e   : > { %v632_v4 = vadd.f32 %v631_v2, %v370_v62  ;;  %v733_v5 = vsel %vm729_vm3, %v459_v63, -inf }
 0x23f   : > { %v745_v6 = vsel %vm729_vm3, %v637_v0, -inf  ;;  %734 = vmax.xlane.f32.xlu1 %v733_v5  ;;  %v730_v7 = vsel %vm729_vm3, %v454_v3, -inf }
 0x240   : > { %746 = vmax.xlane.f32.xlu0 %v745_v6  ;;  %v742_v8 = vsel %vm729_vm3, %v632_v4, -inf }
 0x243   : > { %743 = vmax.xlane.f32.xlu1 %v742_v8 }
 0x244   : > { %731 = vmax.xlane.f32.xlu0 %v730_v7  ;;  %v4215_v9 = vpop.f32.mrb[6].mxu1 }
 0x245   : > { %v548_v10 = vadd.f32 %v4215_v9, %v371_v59  ;;  %v542_v11 = vpop.f32.mrb[7].mxu1 }
 0x246   : > { %v543_v12 = vadd.f32 %v542_v11, %v370_v62 }
 0x247   : > { %v739_v13 = vsel %vm729_vm3, %v548_v10, -inf }
 0x248   : > { %740 = vmax.xlane.f32.xlu0 %v739_v13  ;;  %v736_v26 = vsel %vm729_vm3, %v543_v12, -inf }
 0x24c   : > { %v4229_v27 = vpop.f32.mrb[8].mxu1  ;;  %737 = vmax.xlane.f32.xlu0 %v736_v26 }
 0x24d   : > { %v726_v28 = vadd.f32 %v4229_v27, %v371_v59  ;;  %v720_v29 = vpop.f32.mrb[9].mxu1 }
 0x24e   : > { %v5125_v31 = vadd.f32 %v720_v29, %v370_v62 }
 0x24f   : > { %v751_v30 = vsel %vm729_vm3, %v726_v28, -inf }
 0x250   : > { %752 = vmax.xlane.f32.xlu0 %v751_v30  ;;  %v748_v33 = vsel %vm729_vm3, %v5125_v31, -inf }
 0x254   : > { %4694 = vrot.lane.b32.xlu1 %v5060_v25, %s4946_s14 }
 0x266   : > { %4689 = vrot.lane.b32.xlu0 %v5040_v19, %s4946_s14 }
 0x278   : > { %749 = vmax.xlane.f32.xlu1 %v748_v33 }
 0x2cc   : > { %v735_v34 = vpop.xlane.xlu1 %734 }
 0x2cd   : > { %v747_v35 = vpop.xlane.xlu0 %746  ;;  %v755_v36 = vsub.f32 %v459_v63, %v735_v34 }
 0x2ce   : > { %v759_v37 = vsub.f32 %v637_v0, %v747_v35 }
 0x2cf   : > { %v764_v38 = vmul.f32 1.442695, %v755_v36 }
 0x2d0   : > { %v772_v39 = vmul.f32 1.442695, %v759_v37  ;;  %v744_v41 = vpop.xlane.xlu1 %743 }
 0x2d1   : > { %v732_v40 = vpop.xlane.xlu0 %731  ;;  %4808 = vpow2.f32 %v764_v38  ;;  %v758_v43 = vsub.f32 %v632_v4, %v744_v41 }
 0x2d2   : > { %v754_v42 = vsub.f32 %v454_v3, %v732_v40  ;;  %4810 = vpow2.f32 %v772_v39 }
 0x2d3   : > { %v770_v45 = vmul.f32 1.442695, %v758_v43 }
 0x2d4   : > { %v762_v44 = vmul.f32 1.442695, %v754_v42  ;;  %v5162_v7 = vpop.permute.xlu1 %4694 }
 0x2d5   : > { %v741_v46 = vpop.xlane.xlu0 %740 }
 0x2d6   : > { %4812 = vpow2.f32 %v762_v44  ;;  %v757_v47 = vsub.f32 %v548_v10, %v741_v46 }
 0x2d7   : > { %4814 = vpow2.f32 %v770_v45 }
 0x2d8   : > { %v768_v48 = vmul.f32 1.442695, %v757_v47 }
 0x2d9   : > { %v738_v61 = vpop.xlane.xlu0 %737 }
 0x2da   : > { %4816 = vpow2.f32 %v768_v48  ;;  %v756_v63 = vsub.f32 %v543_v12, %v738_v61 }
 0x2db   : > { %v5129_v49 = vpop.eup %4808 }
 0x2dc   : > { %v781_v50 = vsel %vm729_vm3, %v5129_v49, 0.0  ;;  %v5133_v52 = vpop.eup %4810  ;;  %v766_v1 = vmul.f32 1.442695, %v756_v63 }
 0x2dd   : > { %782 = vadd.xlane.f32.xlu0 %v781_v50  ;;  %v793_v55 = vsel %vm729_vm3, %v5133_v52, 0.0  ;;  %v753_v62 = vpop.xlane.xlu0 %752 }
 0x2de   : > { %v761_v0 = vsub.f32 %v726_v28, %v753_v62  ;;  %4818 = vpow2.f32 %v766_v1 }
 0x2e0   : > { %v4813_v53 = vpop.eup %4812  ;;  %v776_v2 = vmul.f32 1.442695, %v761_v0 }
 0x2e1   : > { %v778_v54 = vsel %vm729_vm3, %v4813_v53, 0.0  ;;  %v5138_v56 = vpop.eup %4814  ;;  %794 = vadd.xlane.f32.xlu0 %v793_v55  ;;  %v4690_v13 = vpop.permute.xlu0 %4689  ;;  %v4696_v55 = vunpack.i.l.bf16 %v5162_v7 }
 0x2e2   : > { %779 = vadd.xlane.f32.xlu1 %v778_v54  ;;  %v790_v59 = vsel %vm729_vm3, %v5138_v56, 0.0  ;;  %4820 = vpow2.f32 %v776_v2  ;;  %v4692_v33 = vunpack.i.h.bf16 %v4690_v13  ;;  %v4691_v34 = vunpack.i.l.bf16 %v4690_v13  ;;  %v3942_v13 = vld [vmem:[%s5718_s2 + $0x18] sm:$0xff] }
 0x2e3   : > { %v4697_v54 = vunpack.i.h.bf16 %v5162_v7 }
 0x2e4   : > { %v5140_v57 = vpop.eup %4816  ;;  %v4494_v40 = vpack.c.bf16 %v4692_v33, %v4691_v34 }
 0x2e5   : > { %v787_v60 = vsel %vm729_vm3, %v5140_v57, 0.0  ;;  %v4500_v61 = vpack.c.bf16 %v4697_v54, %v4696_v55 }
 0x2e6   : > { %791 = vadd.xlane.f32.xlu1 %v790_v59  ;;  %788 = vadd.xlane.f32.xlu0 %v787_v60 }
 0x2e8   : > { %v5150_v3 = vpop.eup %4818 }
 0x2e9   : > { %v784_v5 = vsel %vm729_vm3, %v5150_v3, 0.0 }
 0x2ec   : > { %v5152_v4 = vpop.eup %4820 }
 0x2ed   : > { %v799_v6 = vsel %vm729_vm3, %v5152_v4, 0.0 }
 0x2f7   : > { %4699 = vrot.lane.b32.xlu1 %v5036_v18, %s4946_s14 }
 0x2fc   : > { %1169 = vrot.lane.b32.xlu0 %v5028_v16, %s4947_s15 }
 0x305   : > { %v750_v8 = vpop.xlane.xlu1 %749 }
 0x306   : > { %v760_v9 = vsub.f32 %v5125_v31, %v750_v8 }
 0x308   : > { %v774_v10 = vmul.f32 1.442695, %v760_v9 }
 0x30a   : > { %4822 = vpow2.f32 %v774_v10 }
 0x314   : > { %v5171_v11 = vpop.eup %4822 }
 0x315   : > { %v796_v12 = vsel %vm729_vm3, %v5171_v11, 0.0 }
 0x31b   : > { %785 = vadd.xlane.f32.xlu1 %v784_v5  ;;  %800 = vadd.xlane.f32.xlu0 %v799_v6 }
 0x32c   : > { %1260 = vrot.lane.b32.xlu1 %v5052_v23, %s4947_s15 }
 0x331   : > { %1171 = vrot.lane.b32.xlu0 %v5024_v14, %s4947_s15 }
 0x335   : > { %4704 = vrot.lane.b32.xlu0 %v5056_v24, %s4946_s14  ;;  %s4956_s14 = smov 16  }
 0x339   : > { %1351 = vrot.lane.b32.xlu0 %v5030_v17, %s4947_s15 }
 0x33d   : > { %1442 = vrot.lane.b32.xlu0 %v5050_v22, %s4947_s15 }
 0x350   : > { %797 = vadd.xlane.f32.xlu1 %v796_v12 }
 0x361   : > { %1262 = vrot.lane.b32.xlu1 %v5048_v21, %s4947_s15 }
 0x365   : > { %1353 = vrot.lane.b32.xlu1 %v5026_v15, %s4947_s15 }
 0x369   : > { %1444 = vrot.lane.b32.xlu1 %v5045_v20, %s4947_s15 }
 0x36a   : > { %v783_v26 = vpop.xlane.xlu0 %782 }
 0x36b   : > { %4824 = vrcp.f32 %v783_v26  ;;  %v3941_v26 = vld [vmem:[%s5718_s2 + $0x10] sm:$0xff] }
 0x36e   : > { %v795_v28 = vpop.xlane.xlu0 %794 }
 0x36f   : > { %v780_v27 = vpop.xlane.xlu1 %779 }
 0x370   : > { %4826 = vrcp.f32 %v780_v27 }
 0x371   : > { %4828 = vrcp.f32 %v795_v28 }
 0x373   : > { %v792_v29 = vpop.xlane.xlu1 %791  ;;  %v789_v36 = vpop.xlane.xlu0 %788 }
 0x374   : > { %4830 = vrcp.f32 %v792_v29 }
 0x375   : > { %v4825_v30 = vpop.eup %4824  ;;  %4832 = vrcp.f32 %v789_v36 }
 0x376   : > { %v811_v37 = vmul.f32 %v4825_v30, %v5129_v49 }
 0x377   : > { %v4700_v42 = vpop.permute.xlu1 %4699  ;;  %v1170_v44 = vpop.permute.xlu0 %1169 }
 0x378   : > { %v4702_v45 = vunpack.i.h.bf16 %v4700_v42  ;;  %v4701_v46 = vunpack.i.l.bf16 %v4700_v42 }
 0x37a   : > { %v4827_v31 = vpop.eup %4826  ;;  %v4506_v47 = vpack.c.bf16 %v4702_v45, %v4701_v46 }
 0x37b   : > { %v810_v35 = vmul.f32 %v4827_v31, %v4813_v53  ;;  %v4829_v38 = vpop.eup %4828 }
 0x37c   : > { %v815_v43 = vmul.f32 %v4829_v38, %v5133_v52 }
 0x37d   : > { %4234 = vmatprep.mubr.msk.f32.mxu0 %vm729_vm3, %v810_v35 }
 0x37e   : > { %v4831_v39 = vpop.eup %4830  ;;  %4235 = vmatmul.mubr.msk.f32.vlgmr.msra.gmra.mrb[6].mxu0 %vm729_vm3, %v811_v37 }
 0x37f   : > { %4489 = vmatpush3.bf16.msra.mxu0 %v5092_v51  ;;  %v814_v41 = vmul.f32 %v4831_v39, %v5138_v56  ;;  %v4833_v52 = vpop.eup %4832 }
 0x380   : > { %4496 = vmatprep.subr.msk.bf16.mxu0 %vm5070_vm2, %v4494_v40  ;;  %v813_v60 = vmul.f32 %v4833_v52, %v5140_v57 }
 0x381   : > { %4248 = vmatprep.mubr.msk.f32.mxu0 %vm729_vm3, %v814_v41 }
 0x382   : > { %4249 = vmatmul.mubr.msk.f32.vlgmr.msra.gmra.mrb[8].mxu0 %vm729_vm3, %v815_v43 }
 0x383   : > { %4262 = vmatprep.mubr.msk.f32.mxu0 %vm378_vm1, %v1170_v44 }
 0x388   : > { %4499 = vmatpush3.bf16.xpose.msk.msra.mxu0 %vm5070_vm2, %v4494_v40 }
 0x389   : > { %4508 = vmatprep.subr.msk.bf16.mxu0 %vm5070_vm2, %v4506_v47 }
 0x3a8   : > { %v786_v51 = vpop.xlane.xlu1 %785  ;;  %v801_v48 = vpop.xlane.xlu0 %800 }
 0x3a9   : > { %4834 = vrcp.f32 %v786_v51 }
 0x3aa   : > { %4836 = vrcp.f32 %v801_v48 }
 0x3ac   : > { %v1172_v49 = vpop.permute.xlu0 %1171  ;;  %v1261_v62 = vpop.permute.xlu1 %1260 }
 0x3ad   : > { %4263 = vmatmul.mubr.msk.f32.vlgmr.msra.gmra.mrb[10].mxu0 %vm378_vm1, %v1172_v49 }
 0x3ae   : > { %4511 = vmatpush3.bf16.xpose.msk.msra.mxu0 %vm5070_vm2, %v4506_v47 }
 0x3b0   : > { %v4705_v50 = vpop.permute.xlu0 %4704 }
 0x3b1   : > { %v4706_v5 = vunpack.i.l.bf16 %v4705_v50 }
 0x3b3   : > { %v4835_v53 = vpop.eup %4834 }
 0x3b4   : > { %v1352_v56 = vpop.permute.xlu0 %1351  ;;  %v812_v59 = vmul.f32 %v4835_v53, %v5150_v3  ;;  %v4837_v2 = vpop.eup %4836  ;;  %v4707_v3 = vunpack.i.h.bf16 %v4705_v50 }
 0x3b5   : > { %4276 = vmatprep.mubr.msk.f32.mxu0 %vm378_vm1, %v1352_v56  ;;  %v817_v7 = vmul.f32 %v4837_v2, %v5152_v4 }
 0x3b6   : > { %4241 = vmatprep.mubr.msk.f32.mxu1 %vm729_vm3, %v812_v59 }
 0x3b7   : > { %4242 = vmatmul.mubr.msk.f32.vlgmr.msra.gmra.mrb[10].mxu1 %vm729_vm3, %v813_v60 }
 0x3b8   : > { %4493 = vmatpush3.bf16.msra.mxu1 %v5103_v58  ;;  %v4512_v58 = vpack.c.bf16 %v4707_v3, %v4706_v5  ;;  %v1443_v8 = vpop.permute.xlu0 %1442 }
 0x3b9   : > { %4502 = vmatprep.subr.msk.bf16.mxu1 %vm5070_vm2, %v4500_v61 }
 0x3dd   : > { %v798_v63 = vpop.xlane.xlu1 %797 }
 0x3de   : > { %4838 = vrcp.f32 %v798_v63 }
 0x3e1   : > { %v1263_v0 = vpop.permute.xlu1 %1262 }
 0x3e5   : > { %v1354_v1 = vpop.permute.xlu1 %1353 }
 0x3e6   : > { %4277 = vmatmul.mubr.msk.f32.vlgmr.msra.gmra.mrb[12].mxu0 %vm378_vm1, %v1354_v1 }
 0x3e8   : > { %v4839_v57 = vpop.eup %4838 }
 0x3e9   : > { %v816_v6 = vmul.f32 %v4839_v57, %v5171_v11  ;;  %v1445_v4 = vpop.permute.xlu1 %1444 }
 0x3eb   : > { %4255 = vmatprep.mubr.msk.f32.mxu1 %vm729_vm3, %v816_v6 }
 0x3ec   : > { %4256 = vmatmul.mubr.msk.f32.vlgmr.msra.gmra.mrb[12].mxu1 %vm729_vm3, %v817_v7 }
 0x3ed   : > { %4505 = vmatpush3.bf16.xpose.msk.msra.mxu1 %vm5070_vm2, %v4500_v61  ;;  %4269 = vmatprep.mubr.msk.f32.mxu1 %vm378_vm1, %v1261_v62 }
 0x3ee   : > { %4514 = vmatprep.subr.msk.bf16.mxu1 %vm5070_vm2, %v4512_v58 }
 0x3f4   : > { %4270 = vmatmul.mubr.msk.f32.vlgmr.msra.gmra.mrb[14].mxu1 %vm378_vm1, %v1263_v0 }
 0x3f5   : > { %4517 = vmatpush3.bf16.xpose.msk.msra.mxu1 %vm5070_vm2, %v4512_v58  ;;  %4283 = vmatprep.mubr.msk.f32.mxu1 %vm378_vm1, %v1443_v8 }
 0x3fc   : > { %4284 = vmatmul.mubr.msk.f32.vlgmr.msra.gmra.mrb[16].mxu1 %vm378_vm1, %v1445_v4 }
 0x451   : > { %v5224_v9 = vpop.f32.mrb[6].mxu0 }
 0x452   : > { %v5226_v10 = vpop.f32.mrb[7].mxu0 }
 0x455   : > { %v5228_v11 = vpop.f32.mrb[8].mxu0 }
 0x456   : > { %v5230_v12 = vpop.f32.mrb[9].mxu0 }
 0x480   : > { %v4264_v27 = vpop.f32.mrb[10].mxu0 }
 0x481   : > { %v1257_v28 = vadd.f32 %v4264_v27, %v3942_v13  ;;  %v1251_v29 = vpop.f32.mrb[11].mxu0 }
 0x482   : > { %v1252_v30 = vadd.f32 %v3941_v26, %v1251_v29 }
 0x483   : > { %v1536_v31 = vsel %vm729_vm3, %v1257_v28, -inf }
 0x484   : > { %1537 = vmax.xlane.f32.xlu1 %v1536_v31  ;;  %v1533_v33 = vsel %vm729_vm3, %v1252_v30, -inf }
 0x485   : > { %1534 = vmax.xlane.f32.xlu0 %v1533_v33 }
 0x48a   : > { %v5240_v34 = vpop.f32.mrb[10].mxu1 }
 0x48b   : > { %v5242_v35 = vpop.f32.mrb[11].mxu1 }
 0x4b9   : > { %v4278_v36 = vpop.f32.mrb[12].mxu0 }
 0x4ba   : > { %v1433_v37 = vpop.f32.mrb[13].mxu0  ;;  %v5253_v47 = vadd.f32 %v4278_v36, %v3942_v13 }
 0x4bb   : > { %v5244_v38 = vadd.f32 %v3941_v26, %v1433_v37 }
 0x4bc   : > { %v1548_v52 = vsel %vm729_vm3, %v5253_v47, -inf }
 0x4bd   : > { %v1545_v39 = vsel %vm729_vm3, %v5244_v38, -inf }
 0x4be   : > { %1546 = vmax.xlane.f32.xlu1 %v1545_v39 }
 0x4bf   : > { %v5248_v40 = vpop.f32.mrb[12].mxu1 }
 0x4c0   : > { %v5250_v41 = vpop.f32.mrb[13].mxu1 }
 0x4c7   : > { %v4271_v42 = vpop.f32.mrb[14].mxu1 }
 0x4c8   : > { %v1342_v43 = vpop.f32.mrb[15].mxu1  ;;  %v1348_v45 = vadd.f32 %v4271_v42, %v3942_v13 }
 0x4c9   : > { %v1343_v44 = vadd.f32 %v3941_v26, %v1342_v43 }
 0x4ca   : > { %v1542_v48 = vsel %vm729_vm3, %v1348_v45, -inf }
 0x4cb   : > { %v1539_v46 = vsel %vm729_vm3, %v1343_v44, -inf }
 0x4cc   : > { %1540 = vmax.xlane.f32.xlu0 %v1539_v46 }
 0x4cf   : > { %v4285_v51 = vpop.f32.mrb[16].mxu1  ;;  %4709 = vrot.lane.b32.xlu1 %v5040_v19, %s4948_s21 }
 0x4d0   : > { %v1524_v49 = vpop.f32.mrb[17].mxu1  ;;  %1543 = vmax.xlane.f32.xlu0 %v1542_v48  ;;  %v1530_v50 = vadd.f32 %v4285_v51, %v3942_v13 }
 0x4d1   : > { %v5269_v54 = vadd.f32 %v3941_v26, %v1524_v49 }
 0x4d2   : > { %v1554_v53 = vsel %vm729_vm3, %v1530_v50, -inf }
 0x4d3   : > { %4719 = vrot.lane.b32.xlu1 %v5036_v18, %s4948_s21  ;;  %v1551_v55 = vsel %vm729_vm3, %v5269_v54, -inf }
 0x4d4   : > { %1549 = vmax.xlane.f32.xlu0 %v1548_v52 }
 0x4d7   : > { %4724 = vrot.lane.b32.xlu1 %v5056_v24, %s4948_s21 }
 0x4d8   : > { %1555 = vmax.xlane.f32.xlu0 %v1554_v53 }
 0x4db   : > { %4734 = vrot.lane.b32.xlu1 %v5060_v25, %s4949_s22 }
 0x4ee   : > { %4714 = vrot.lane.b32.xlu0 %v5060_v25, %s4948_s21 }
 0x4f2   : > { %4729 = vrot.lane.b32.xlu0 %v5040_v19, %s4949_s22 }
 0x4f6   : > { %1972 = vrot.lane.b32.xlu0 %v5028_v16, %s4950_s23 }
 0x4ff   : > { %1552 = vmax.xlane.f32.xlu1 %v1551_v55 }
 0x510   : > { %4739 = vrot.lane.b32.xlu1 %v5036_v18, %s4949_s22 }
 0x511   : > { %v1538_v56 = vpop.xlane.xlu1 %1537 }
 0x512   : > { %v1558_v59 = vsub.f32 %v1257_v28, %v1538_v56  ;;  %v1535_v61 = vpop.xlane.xlu0 %1534 }
 0x513   : > { %v1557_v62 = vsub.f32 %v1252_v30, %v1535_v61 }
 0x514   : > { %v1567_v60 = vmul.f32 1.442695, %v1558_v59 }
 0x515   : > { %v1565_v1 = vmul.f32 1.442695, %v1557_v62 }
 0x516   : > { %4840 = vpow2.f32 %v1567_v60 }
 0x517   : > { %4842 = vpow2.f32 %v1565_v1 }
 0x520   : > { %v5275_v63 = vpop.eup %4840 }
 0x521   : > { %v1584_v0 = vsel %vm729_vm3, %v5275_v63, 0.0  ;;  %v5279_v2 = vpop.eup %4842 }
 0x522   : > { %1585 = vadd.xlane.f32.xlu0 %v1584_v0  ;;  %v1581_v57 = vsel %vm729_vm3, %v5279_v2, 0.0 }
 0x534   : > { %1582 = vadd.xlane.f32.xlu1 %v1581_v57 }
 0x54b   : > { %v1547_v3 = vpop.xlane.xlu1 %1546 }
 0x54c   : > { %v1561_v27 = vsub.f32 %v5244_v38, %v1547_v3 }
 0x54e   : > { %v1573_v30 = vmul.f32 1.442695, %v1561_v27 }
 0x54f   : > { %v4710_v5 = vpop.permute.xlu1 %4709 }
 0x550   : > { %v4712_v6 = vunpack.i.h.bf16 %v4710_v5  ;;  %v4711_v7 = vunpack.i.l.bf16 %v4710_v5 }
 0x552   : > { %v4518_v58 = vpack.c.bf16 %v4712_v6, %v4711_v7 }
 0x553   : > { %v4720_v8 = vpop.permute.xlu1 %4719 }
 0x554   : > { %v4722_v4 = vunpack.i.h.bf16 %v4720_v8  ;;  %v4721_v13 = vunpack.i.l.bf16 %v4720_v8  ;;  %4519 = vmatprep.subr.bf16.mxu0 %v4518_v58 }
 0x555   : > { %4521 = vmatpush3.bf16.msra.mxu0 %v4518_v58 }
 0x556   : > { %v5283_v26 = vpack.c.bf16 %v4722_v4, %v4721_v13 }
 0x557   : > { %v4725_v48 = vpop.permute.xlu1 %4724 }
 0x558   : > { %4527 = vmatprep.subr.bf16.mxu0 %v5283_v26  ;;  %v4727_v56 = vunpack.i.h.bf16 %v4725_v48 }
 0x559   : > { %v1541_v28 = vpop.xlane.xlu0 %1540 }
 0x55a   : > { %v1559_v29 = vsub.f32 %v1343_v44, %v1541_v28 }
 0x55b   : > { %v4735_v5 = vpop.permute.xlu1 %4734 }
 0x55c   : > { %v1569_v31 = vmul.f32 1.442695, %v1559_v29 }
 0x55d   : > { %v1544_v33 = vpop.xlane.xlu0 %1543 }
 0x55e   : > { %4844 = vpow2.f32 %v1569_v31  ;;  %v1560_v36 = vsub.f32 %v1348_v45, %v1544_v33 }
 0x55f   : > { %4846 = vpow2.f32 %v1573_v30 }
 0x560   : > { %v1571_v37 = vmul.f32 1.442695, %v1560_v36 }
 0x561   : > { %v1550_v39 = vpop.xlane.xlu0 %1549 }
 0x562   : > { %4848 = vpow2.f32 %v1571_v37  ;;  %v1562_v42 = vsub.f32 %v5253_v47, %v1550_v39  ;;  %v4726_v47 = vunpack.i.l.bf16 %v4725_v48 }
 0x564   : > { %v1575_v43 = vmul.f32 1.442695, %v1562_v42  ;;  %v5300_v62 = vpack.c.bf16 %v4727_v56, %v4726_v47 }
 0x565   : > { %v1556_v46 = vpop.xlane.xlu0 %1555 }
 0x566   : > { %4850 = vpow2.f32 %v1575_v43  ;;  %v1564_v51 = vsub.f32 %v1530_v50, %v1556_v46 }
 0x568   : > { %v5288_v38 = vpop.eup %4844  ;;  %v1579_v49 = vmul.f32 1.442695, %v1564_v51 }
 0x569   : > { %v4715_v44 = vpop.permute.xlu0 %4714  ;;  %v1587_v52 = vsel %vm729_vm3, %v5288_v38, 0.0  ;;  %v5292_v53 = vpop.eup %4846 }
 0x56a   : > { %4852 = vpow2.f32 %v1579_v49  ;;  %v4717_v45 = vunpack.i.h.bf16 %v4715_v44  ;;  %v4716_v55 = vunpack.i.l.bf16 %v4715_v44  ;;  %1588 = vadd.xlane.f32.xlu1 %v1587_v52  ;;  %v1593_v50 = vsel %vm729_vm3, %v5292_v53, 0.0 }
 0x56b   : > { %v4737_v52 = vunpack.i.h.bf16 %v4735_v5 }
 0x56c   : > { %v5294_v59 = vpop.eup %4848  ;;  %v4522_v60 = vpack.c.bf16 %v4717_v45, %v4716_v55 }
 0x56d   : > { %v1590_v61 = vsel %vm729_vm3, %v5294_v59, 0.0  ;;  %v4730_v13 = vpop.permute.xlu0 %4729 }
 0x56e   : > { %1594 = vadd.xlane.f32.xlu1 %v1593_v50  ;;  %1591 = vadd.xlane.f32.xlu0 %v1590_v61  ;;  %v4732_v33 = vunpack.i.h.bf16 %v4730_v13  ;;  %v4731_v36 = vunpack.i.l.bf16 %v4730_v13 }
 0x56f   : > { %4523 = vmatprep.subr.bf16.mxu1 %v4522_v60 }
 0x570   : > { %v5302_v0 = vpop.eup %4850  ;;  %4525 = vmatpush3.bf16.msra.mxu1 %v4522_v60  ;;  %v4534_v42 = vpack.c.bf16 %v4732_v33, %v4731_v36 }
 0x571   : > { %4531 = vmatprep.subr.bf16.mxu1 %v5300_v62  ;;  %v1596_v1 = vsel %vm729_vm3, %v5302_v0, 0.0 }
 0x572   : > { %1597 = vadd.xlane.f32.xlu0 %v1596_v1 }
 0x574   : > { %v5307_v57 = vpop.eup %4852 }
 0x575   : > { %v1602_v3 = vsel %vm729_vm3, %v5307_v57, 0.0 }
 0x576   : > { %1603 = vadd.xlane.f32.xlu0 %v1602_v3 }
 0x57f   : > { %2063 = vrot.lane.b32.xlu1 %v5052_v23, %s4950_s23 }
 0x58c   : > { %1974 = vrot.lane.b32.xlu0 %v5024_v14, %s4950_s23  ;;  %v1553_v6 = vpop.xlane.xlu1 %1552 }
 0x58d   : > { %v1563_v7 = vsub.f32 %v5269_v54, %v1553_v6  ;;  %v1973_v54 = vpop.permute.xlu0 %1972 }
 0x58f   : > { %v1577_v58 = vmul.f32 1.442695, %v1563_v7 }
 0x590   : > { %4744 = vrot.lane.b32.xlu0 %v5056_v24, %s4949_s22  ;;  %v4740_v27 = vpop.permute.xlu1 %4739 }
 0x591   : > { %4854 = vpow2.f32 %v1577_v58  ;;  %v4742_v47 = vunpack.i.h.bf16 %v4740_v27  ;;  %v4741_v60 = vunpack.i.l.bf16 %v4740_v27 }
 0x593   : > { %v4546_v3 = vpack.c.bf16 %v4742_v47, %v4741_v60 }
 0x594   : > { %2154 = vrot.lane.b32.xlu0 %v5030_v17, %s4950_s23 }
 0x598   : > { %2245 = vrot.lane.b32.xlu0 %v5050_v22, %s4950_s23 }
 0x59b   : > { %v5322_v8 = vpop.eup %4854 }
 0x59c   : > { %v1599_v4 = vsel %vm729_vm3, %v5322_v8, 0.0 }
 0x5a3   : > { %1600 = vadd.xlane.f32.xlu1 %v1599_v4 }
 0x5af   : > { %v1586_v28 = vpop.xlane.xlu0 %1585 }
 0x5b0   : > { %4856 = vrcp.f32 %v1586_v28 }
 0x5b4   : > { %2065 = vrot.lane.b32.xlu1 %v5048_v21, %s4950_s23 }
 0x5b8   : > { %2156 = vrot.lane.b32.xlu1 %v5026_v15, %s4950_s23 }
 0x5ba   : > { %v4857_v30 = vpop.eup %4856 }
 0x5bb   : > { %v1614_v39 = vmul.f32 %v4857_v30, %v5275_v63 }
 0x5bc   : > { %2247 = vrot.lane.b32.xlu1 %v5045_v20, %s4950_s23 }
 0x5c1   : > { %v1583_v29 = vpop.xlane.xlu1 %1582 }
 0x5c2   : > { %4858 = vrcp.f32 %v1583_v29 }
 0x5cc   : > { %v4859_v31 = vpop.eup %4858 }
 0x5cd   : > { %v1613_v37 = vmul.f32 %v4859_v31, %v5279_v2 }
 0x5cf   : > { %4290 = vmatprep.mubr.msk.f32.mxu0 %vm729_vm3, %v1613_v37 }
 0x5d0   : > { %4291 = vmatmul.mubr.msk.f32.vlgmr.msra.gmra.mrb[14].mxu0 %vm729_vm3, %v1614_v39  ;;  %v3968_v39 = vld [vmem:[%s5718_s2 + $0x28] sm:$0xff] }
 0x5d1   : > { %4529 = vmatpush3.bf16.msra.mxu0 %v5283_v26  ;;  %v4736_v26 = vunpack.i.l.bf16 %v4735_v5 }
 0x5d2   : > { %4536 = vmatprep.subr.msk.bf16.mxu0 %vm5070_vm2, %v4534_v42 }
 0x5d3   : > { %v4540_v1 = vpack.c.bf16 %v4737_v52, %v4736_v26 }
 0x5f7   : > { %v1589_v43 = vpop.xlane.xlu1 %1588 }
 0x5f8   : > { %4860 = vrcp.f32 %v1589_v43 }
 0x5fb   : > { %v1595_v46 = vpop.xlane.xlu1 %1594  ;;  %v1592_v51 = vpop.xlane.xlu0 %1591 }
 0x5fc   : > { %4862 = vrcp.f32 %v1595_v46 }
 0x5fd   : > { %4864 = vrcp.f32 %v1592_v51 }
 0x5ff   : > { %v1598_v48 = vpop.xlane.xlu0 %1597 }
 0x600   : > { %4866 = vrcp.f32 %v1598_v48 }
 0x602   : > { %v4861_v2 = vpop.eup %4860 }
 0x603   : > { %v1604_v63 = vpop.xlane.xlu0 %1603  ;;  %v1615_v49 = vmul.f32 %v4861_v2, %v5288_v38 }
 0x604   : > { %4868 = vrcp.f32 %v1604_v63 }
 0x605   : > { %4297 = vmatprep.mubr.msk.f32.mxu1 %vm729_vm3, %v1615_v49 }
 0x606   : > { %v4863_v44 = vpop.eup %4862 }
 0x607   : > { %v4865_v45 = vpop.eup %4864  ;;  %v1617_v55 = vmul.f32 %v4863_v44, %v5292_v53  ;;  %v1975_v50 = vpop.permute.xlu0 %1974 }
 0x608   : > { %v1616_v56 = vmul.f32 %v4865_v45, %v5294_v59 }
 0x609   : > { %4304 = vmatprep.mubr.msk.f32.mxu0 %vm729_vm3, %v1617_v55 }
 0x60a   : > { %v4867_v61 = vpop.eup %4866  ;;  %4298 = vmatmul.mubr.msk.f32.vlgmr.msra.gmra.mrb[18].mxu1 %vm729_vm3, %v1616_v56 }
 0x60b   : > { %v1618_v38 = vmul.f32 %v4867_v61, %v5302_v0  ;;  %4533 = vmatpush3.bf16.msra.mxu1 %v5300_v62  ;;  %v4745_v53 = vpop.permute.xlu0 %4744  ;;  %v2064_v62 = vpop.permute.xlu1 %2063 }
 0x60c   : > { %4542 = vmatprep.subr.msk.bf16.mxu1 %vm5070_vm2, %v4540_v1  ;;  %v4747_v4 = vunpack.i.h.bf16 %v4745_v53  ;;  %v4746_v13 = vunpack.i.l.bf16 %v4745_v53 }
 0x60d   : > { %4305 = vmatmul.mubr.msk.f32.vlgmr.msra.gmra.mrb[16].mxu0 %vm729_vm3, %v1618_v38 }
 0x60e   : > { %4539 = vmatpush3.bf16.xpose.msk.msra.mxu0 %vm5070_vm2, %v4534_v42  ;;  %4318 = vmatprep.mubr.msk.f32.mxu0 %vm378_vm1, %v1973_v54  ;;  %v4869_v7 = vpop.eup %4868  ;;  %v4552_v28 = vpack.c.bf16 %v4747_v4, %v4746_v13  ;;  %v3967_v42 = vld [vmem:[%s5718_s2 + $0x20] sm:$0xff] }
 0x60f   : > { %4548 = vmatprep.subr.msk.bf16.mxu0 %vm5070_vm2, %v4546_v3  ;;  %v2155_v59 = vpop.permute.xlu0 %2154  ;;  %v1620_v27 = vmul.f32 %v4869_v7, %v5307_v57 }
 0x613   : > { %v2246_v29 = vpop.permute.xlu0 %2245 }
 0x615   : > { %4319 = vmatmul.mubr.msk.f32.vlgmr.msra.gmra.mrb[18].mxu0 %vm378_vm1, %v1975_v50 }
 0x616   : > { %4551 = vmatpush3.bf16.xpose.msk.msra.mxu0 %vm5070_vm2, %v4546_v3  ;;  %4332 = vmatprep.mubr.msk.f32.mxu0 %vm378_vm1, %v2155_v59 }
 0x630   : > { %v1601_v0 = vpop.xlane.xlu1 %1600 }
 0x631   : > { %4870 = vrcp.f32 %v1601_v0 }
 0x634   : > { %v2066_v5 = vpop.permute.xlu1 %2065 }
 0x638   : > { %v2157_v6 = vpop.permute.xlu1 %2156 }
 0x639   : > { %4333 = vmatmul.mubr.msk.f32.vlgmr.msra.gmra.mrb[20].mxu0 %vm378_vm1, %v2157_v6 }
 0x63b   : > { %v4871_v58 = vpop.eup %4870 }
 0x63c   : > { %v1619_v54 = vmul.f32 %v4871_v58, %v5322_v8  ;;  %v2248_v57 = vpop.permute.xlu1 %2247 }
 0x63e   : > { %4311 = vmatprep.mubr.msk.f32.mxu1 %vm729_vm3, %v1619_v54 }
 0x63f   : > { %4312 = vmatmul.mubr.msk.f32.vlgmr.msra.gmra.mrb[20].mxu1 %vm729_vm3, %v1620_v27 }
 0x640   : > { %4545 = vmatpush3.bf16.xpose.msk.msra.mxu1 %vm5070_vm2, %v4540_v1  ;;  %4325 = vmatprep.mubr.msk.f32.mxu1 %vm378_vm1, %v2064_v62 }
 0x641   : > { %4554 = vmatprep.subr.msk.bf16.mxu1 %vm5070_vm2, %v4552_v28 }
 0x647   : > { %4326 = vmatmul.mubr.msk.f32.vlgmr.msra.gmra.mrb[22].mxu1 %vm378_vm1, %v2066_v5 }
 0x648   : > { %4557 = vmatpush3.bf16.xpose.msk.msra.mxu1 %vm5070_vm2, %v4552_v28  ;;  %4339 = vmatprep.mubr.msk.f32.mxu1 %vm378_vm1, %v2246_v29 }
 0x64f   : > { %4340 = vmatmul.mubr.msk.f32.vlgmr.msra.gmra.mrb[24].mxu1 %vm378_vm1, %v2248_v57 }
 0x6a3   : > { %v5374_v8 = vpop.f32.mrb[14].mxu0 }
 0x6a4   : > { %v5376_v30 = vpop.f32.mrb[15].mxu0 }
 0x6dd   : > { %v5378_v31 = vpop.f32.mrb[18].mxu1 }
 0x6de   : > { %v5380_v33 = vpop.f32.mrb[19].mxu1 }
 0x6e0   : > { %v5382_v36 = vpop.f32.mrb[16].mxu0 }
 0x6e1   : > { %v5384_v37 = vpop.f32.mrb[17].mxu0 }
 0x6e8   : > { %v4320_v43 = vpop.f32.mrb[18].mxu0 }
 0x6e9   : > { %v2060_v46 = vadd.f32 %v4320_v43, %v3968_v39  ;;  %v2054_v51 = vpop.f32.mrb[19].mxu0 }
 0x6ea   : > { %v2055_v48 = vadd.f32 %v3967_v42, %v2054_v51 }
 0x6eb   : > { %v2339_v2 = vsel %vm729_vm3, %v2060_v46, -inf }
 0x6ec   : > { %2340 = vmax.xlane.f32.xlu1 %v2339_v2  ;;  %v2336_v63 = vsel %vm729_vm3, %v2055_v48, -inf }
 0x6ed   : > { %2337 = vmax.xlane.f32.xlu0 %v2336_v63 }
 0x70c   : > { %v4334_v49 = vpop.f32.mrb[20].mxu0 }
 0x70d   : > { %v2236_v44 = vpop.f32.mrb[21].mxu0  ;;  %v5403_v1 = vadd.f32 %v4334_v49, %v3968_v39 }
 0x70e   : > { %v5394_v52 = vadd.f32 %v3967_v42, %v2236_v44 }
 0x70f   : > { %v2351_v0 = vsel %vm729_vm3, %v5403_v1, -inf }
 0x710   : > { %v2348_v26 = vsel %vm729_vm3, %v5394_v52, -inf }
 0x711   : > { %2349 = vmax.xlane.f32.xlu1 %v2348_v26 }
 0x712   : > { %v5398_v45 = vpop.f32.mrb[20].mxu1 }
 0x713   : > { %v5400_v55 = vpop.f32.mrb[21].mxu1 }
 0x71a   : > { %v4327_v56 = vpop.f32.mrb[22].mxu1 }
 0x71b   : > { %v2145_v47 = vpop.f32.mrb[23].mxu1  ;;  %v2151_v50 = vadd.f32 %v4327_v56, %v3968_v39 }
 0x71c   : > { %v2146_v60 = vadd.f32 %v3967_v42, %v2145_v47 }
 0x71d   : > { %v2345_v3 = vsel %vm729_vm3, %v2151_v50, -inf }
 0x71e   : > { %v2342_v61 = vsel %vm729_vm3, %v2146_v60, -inf }
 0x71f   : > { %2343 = vmax.xlane.f32.xlu0 %v2342_v61 }
 0x722   : > { %v4341_v38 = vpop.f32.mrb[24].mxu1  ;;  %4749 = vrot.lane.b32.xlu1 %v5040_v19, %s4951_s30 }
 0x723   : > { %v2327_v53 = vpop.f32.mrb[25].mxu1  ;;  %2346 = vmax.xlane.f32.xlu0 %v2345_v3  ;;  %v2333_v62 = vadd.f32 %v4341_v38, %v3968_v39 }
 0x724   : > { %v5407_v59 = vadd.f32 %v3967_v42, %v2327_v53 }
 0x725   : > { %v2357_v5 = vsel %vm729_vm3, %v2333_v62, -inf }
 0x726   : > { %4759 = vrot.lane.b32.xlu1 %v5036_v18, %s4951_s30  ;;  %v2354_v6 = vsel %vm729_vm3, %v5407_v59, -inf }
 0x727   : > { %2352 = vmax.xlane.f32.xlu0 %v2351_v0 }
 0x72a   : > { %4764 = vrot.lane.b32.xlu1 %v5056_v24, %s4951_s30 }
 0x72b   : > { %2358 = vmax.xlane.f32.xlu0 %v2357_v5 }
 0x72e   : > { %4774 = vrot.lane.b32.xlu1 %v5060_v25, %s4952_s6 }
 0x741   : > { %4754 = vrot.lane.b32.xlu0 %v5060_v25, %s4951_s30 }
 0x745   : > { %4769 = vrot.lane.b32.xlu0 %v5040_v19, %s4952_s6 }
 0x749   : > { %4779 = vrot.lane.b32.xlu0 %v5036_v18, %s4952_s6 }
 0x752   : > { %2355 = vmax.xlane.f32.xlu1 %v2354_v6 }
 0x763   : > { %2775 = vrot.lane.b32.xlu1 %v5028_v16, %s4953_s7 }
 0x779   : > { %v2341_v7 = vpop.xlane.xlu1 %2340 }
 0x77a   : > { %v2361_v58 = vsub.f32 %v2060_v46, %v2341_v7  ;;  %v2338_v4 = vpop.xlane.xlu0 %2337 }
 0x77b   : > { %v2360_v13 = vsub.f32 %v2055_v48, %v2338_v4 }
 0x77c   : > { %v2370_v54 = vmul.f32 1.442695, %v2361_v58 }
 0x77d   : > { %v2368_v27 = vmul.f32 1.442695, %v2360_v13 }
 0x77e   : > { %4872 = vpow2.f32 %v2370_v54 }
 0x77f   : > { %4874 = vpow2.f32 %v2368_v27 }
 0x788   : > { %v5425_v28 = vpop.eup %4872 }
 0x789   : > { %v5427_v29 = vpop.eup %4874  ;;  %v2387_v57 = vsel %vm729_vm3, %v5425_v28, 0.0 }
 0x78a   : > { %2388 = vadd.xlane.f32.xlu0 %v2387_v57  ;;  %v2384_v39 = vsel %vm729_vm3, %v5427_v29, 0.0 }
 0x78b   : > { %2385 = vadd.xlane.f32.xlu1 %v2384_v39 }
 0x79e   : > { %v2350_v16 = vpop.xlane.xlu1 %2349 }
 0x79f   : > { %v2364_v44 = vsub.f32 %v5394_v52, %v2350_v16 }
 0x7a1   : > { %v2376_v47 = vmul.f32 1.442695, %v2364_v44 }
 0x7a2   : > { %v4750_v42 = vpop.permute.xlu1 %4749 }
 0x7a3   : > { %v4752_v43 = vunpack.i.h.bf16 %v4750_v42  ;;  %v4751_v46 = vunpack.i.l.bf16 %v4750_v42 }
 0x7a5   : > { %v4558_v51 = vpack.c.bf16 %v4752_v43, %v4751_v46 }
 0x7a6   : > { %v4760_v48 = vpop.permute.xlu1 %4759 }
 0x7a7   : > { %v4762_v2 = vunpack.i.h.bf16 %v4760_v48  ;;  %v4761_v63 = vunpack.i.l.bf16 %v4760_v48  ;;  %4559 = vmatprep.subr.bf16.mxu0 %v4558_v51 }
 0x7a8   : > { %4561 = vmatpush3.bf16.msra.mxu0 %v4558_v51 }
 0x7a9   : > { %v5433_v49 = vpack.c.bf16 %v4762_v2, %v4761_v63 }
 0x7aa   : > { %v4765_v4 = vpop.permute.xlu1 %4764 }
 0x7ab   : > { %4567 = vmatprep.subr.bf16.mxu0 %v5433_v49  ;;  %v4767_v39 = vunpack.i.h.bf16 %v4765_v4 }
 0x7ac   : > { %v2344_v26 = vpop.xlane.xlu0 %2343 }
 0x7ad   : > { %v2362_v56 = vsub.f32 %v2146_v60, %v2344_v26 }
 0x7ae   : > { %v4775_v44 = vpop.permute.xlu1 %4774 }
 0x7af   : > { %v2372_v61 = vmul.f32 1.442695, %v2362_v56 }
 0x7b0   : > { %v2347_v38 = vpop.xlane.xlu0 %2346 }
 0x7b1   : > { %4876 = vpow2.f32 %v2372_v61  ;;  %v2363_v3 = vsub.f32 %v2151_v50, %v2347_v38 }
 0x7b2   : > { %4878 = vpow2.f32 %v2376_v47 }
 0x7b3   : > { %v2374_v53 = vmul.f32 1.442695, %v2363_v3 }
 0x7b4   : > { %v2353_v0 = vpop.xlane.xlu0 %2352 }
 0x7b5   : > { %4880 = vpow2.f32 %v2374_v53  ;;  %v2365_v5 = vsub.f32 %v5403_v1, %v2353_v0  ;;  %v4766_v1 = vunpack.i.l.bf16 %v4765_v4 }
 0x7b7   : > { %v2378_v6 = vmul.f32 1.442695, %v2365_v5  ;;  %v5450_v46 = vpack.c.bf16 %v4767_v39, %v4766_v1 }
 0x7b8   : > { %v2359_v7 = vpop.xlane.xlu0 %2358 }
 0x7b9   : > { %4882 = vpow2.f32 %v2378_v6  ;;  %v2367_v58 = vsub.f32 %v2333_v62, %v2359_v7 }
 0x7bb   : > { %v5438_v52 = vpop.eup %4876  ;;  %v2382_v13 = vmul.f32 1.442695, %v2367_v58 }
 0x7bc   : > { %v4755_v60 = vpop.permute.xlu0 %4754  ;;  %v2390_v54 = vsel %vm729_vm3, %v5438_v52, 0.0  ;;  %v5442_v27 = vpop.eup %4878 }
 0x7bd   : > { %4884 = vpow2.f32 %v2382_v13  ;;  %v4757_v50 = vunpack.i.h.bf16 %v4755_v60  ;;  %v4756_v57 = vunpack.i.l.bf16 %v4755_v60  ;;  %2391 = vadd.xlane.f32.xlu1 %v2390_v54  ;;  %v2396_v62 = vsel %vm729_vm3, %v5442_v27, 0.0 }
 0x7be   : > { %v4777_v54 = vunpack.i.h.bf16 %v4775_v44 }
 0x7bf   : > { %v5444_v16 = vpop.eup %4880  ;;  %v4562_v42 = vpack.c.bf16 %v4757_v50, %v4756_v57 }
 0x7c0   : > { %v2393_v43 = vsel %vm729_vm3, %v5444_v16, 0.0 }
 0x7c1   : > { %2397 = vadd.xlane.f32.xlu1 %v2396_v62  ;;  %2394 = vadd.xlane.f32.xlu0 %v2393_v43 }
 0x7c2   : > { %4563 = vmatprep.subr.bf16.mxu1 %v4562_v42 }
 0x7c3   : > { %v5452_v51 = vpop.eup %4882  ;;  %4565 = vmatpush3.bf16.msra.mxu1 %v4562_v42 }
 0x7c4   : > { %4571 = vmatprep.subr.bf16.mxu1 %v5450_v46  ;;  %v2399_v48 = vsel %vm729_vm3, %v5452_v51, 0.0 }
 0x7c5   : > { %2400 = vadd.xlane.f32.xlu0 %v2399_v48 }
 0x7c7   : > { %v5457_v2 = vpop.eup %4884 }
 0x7c8   : > { %v2405_v63 = vsel %vm729_vm3, %v5457_v2, 0.0 }
 0x7c9   : > { %2406 = vadd.xlane.f32.xlu0 %v2405_v63 }
 0x7d2   : > { %4784 = vrot.lane.b32.xlu1 %v5056_v24, %s4952_s6  ;;  %s226_s6 = scalar_lea.vmem %s5721_s5, %s3906_s29 }
 0x7df   : > { %2777 = vrot.lane.b32.xlu0 %v5024_v14, %s4953_s7  ;;  %v2356_v26 = vpop.xlane.xlu1 %2355  ;;  %v4770_v14 = vpop.permute.xlu0 %4769 }
 0x7e0   : > { %v2366_v56 = vsub.f32 %v5407_v59, %v2356_v26  ;;  %v4772_v0 = vunpack.i.h.bf16 %v4770_v14  ;;  %v4771_v5 = vunpack.i.l.bf16 %v4770_v14 }
 0x7e2   : > { %v2380_v47 = vmul.f32 1.442695, %v2366_v56 }
 0x7e3   : > { %2866 = vrot.lane.b32.xlu0 %v5052_v23, %s4953_s7  ;;  %v2776_v23 = vpop.permute.xlu1 %2775 }
 0x7e4   : > { %4886 = vpow2.f32 %v2380_v47 }
 0x7e7   : > { %2957 = vrot.lane.b32.xlu0 %v5030_v17, %s4953_s7  ;;  %v4780_v17 = vpop.permute.xlu0 %4779 }
 0x7e8   : > { %v4782_v1 = vunpack.i.h.bf16 %v4780_v17  ;;  %v4781_v42 = vunpack.i.l.bf16 %v4780_v17 }
 0x7ea   : > { %v4586_v63 = vpack.c.bf16 %v4782_v1, %v4781_v42 }
 0x7eb   : > { %3048 = vrot.lane.b32.xlu0 %v5050_v22, %s4953_s7 }
 0x7ee   : > { %v5472_v61 = vpop.eup %4886 }
 0x7ef   : > { %v2402_v38 = vsel %vm729_vm3, %v5472_v61, 0.0 }
 0x7f6   : > { %2403 = vadd.xlane.f32.xlu1 %v2402_v38 }
 0x807   : > { %2868 = vrot.lane.b32.xlu1 %v5048_v21, %s4953_s7 }
 0x80b   : > { %2959 = vrot.lane.b32.xlu1 %v5026_v15, %s4953_s7  ;;  %v4574_v15 = vpack.c.bf16 %v4772_v0, %v4771_v5 }
 0x80f   : > { %3050 = vrot.lane.b32.xlu1 %v5045_v20, %s4953_s7 }
 0x817   : > { %v2389_v59 = vpop.xlane.xlu0 %2388 }
 0x818   : > { %4888 = vrcp.f32 %v2389_v59  ;;  %v2386_v22 = vpop.xlane.xlu1 %2385 }
 0x819   : > { %4890 = vrcp.f32 %v2386_v22 }
 0x822   : > { %v4889_v3 = vpop.eup %4888 }
 0x823   : > { %v4891_v53 = vpop.eup %4890  ;;  %v2417_v21 = vmul.f32 %v4889_v3, %v5425_v28 }
 0x824   : > { %v2416_v6 = vmul.f32 %v4891_v53, %v5427_v29 }
 0x826   : > { %4346 = vmatprep.mubr.msk.f32.mxu0 %vm729_vm3, %v2416_v6 }
 0x827   : > { %4347 = vmatmul.mubr.msk.f32.vlgmr.msra.gmra.mrb[22].mxu0 %vm729_vm3, %v2417_v21  ;;  %v3993_v21 = vld [vmem:[%s5718_s2 + $0x30] sm:$0xff] }
 0x828   : > { %4569 = vmatpush3.bf16.msra.mxu0 %v5433_v49  ;;  %v4776_v49 = vunpack.i.l.bf16 %v4775_v44 }
 0x829   : > { %4576 = vmatprep.subr.msk.bf16.mxu0 %vm5070_vm2, %v4574_v15 }
 0x82a   : > { %v4580_v48 = vpack.c.bf16 %v4777_v54, %v4776_v49 }
 0x84a   : > { %v2392_v20 = vpop.xlane.xlu1 %2391 }
 0x84b   : > { %4892 = vrcp.f32 %v2392_v20 }
 0x84e   : > { %v2398_v7 = vpop.xlane.xlu1 %2397  ;;  %v2395_v58 = vpop.xlane.xlu0 %2394 }
 0x84f   : > { %4894 = vrcp.f32 %v2398_v7 }
 0x850   : > { %4896 = vrcp.f32 %v2395_v58 }
 0x852   : > { %v2401_v4 = vpop.xlane.xlu0 %2400 }
 0x853   : > { %4898 = vrcp.f32 %v2401_v4 }
 0x855   : > { %v4893_v29 = vpop.eup %4892 }
 0x856   : > { %v2407_v28 = vpop.xlane.xlu0 %2406  ;;  %v2418_v13 = vmul.f32 %v4893_v29, %v5438_v52 }
 0x857   : > { %4900 = vrcp.f32 %v2407_v28 }
 0x858   : > { %4353 = vmatprep.mubr.msk.f32.mxu1 %vm729_vm3, %v2418_v13 }
 0x859   : > { %v4895_v60 = vpop.eup %4894 }
 0x85a   : > { %v4897_v50 = vpop.eup %4896  ;;  %v2420_v57 = vmul.f32 %v4895_v60, %v5442_v27  ;;  %v2778_v62 = vpop.permute.xlu0 %2777 }
 0x85b   : > { %v2419_v39 = vmul.f32 %v4897_v50, %v5444_v16 }
 0x85c   : > { %4360 = vmatprep.mubr.msk.f32.mxu0 %vm729_vm3, %v2420_v57 }
 0x85d   : > { %v4899_v43 = vpop.eup %4898  ;;  %4354 = vmatmul.mubr.msk.f32.vlgmr.msra.gmra.mrb[26].mxu1 %vm729_vm3, %v2419_v39 }
 0x85e   : > { %v2421_v52 = vmul.f32 %v4899_v43, %v5452_v51  ;;  %4573 = vmatpush3.bf16.msra.mxu1 %v5450_v46  ;;  %v2867_v27 = vpop.permute.xlu0 %2866  ;;  %v4785_v46 = vpop.permute.xlu1 %4784 }
 0x85f   : > { %4582 = vmatprep.subr.msk.bf16.mxu1 %vm5070_vm2, %v4580_v48  ;;  %v4787_v38 = vunpack.i.h.bf16 %v4785_v46  ;;  %v4786_v14 = vunpack.i.l.bf16 %v4785_v46 }
 0x860   : > { %4361 = vmatmul.mubr.msk.f32.vlgmr.msra.gmra.mrb[24].mxu0 %vm729_vm3, %v2421_v52 }
 0x861   : > { %4579 = vmatpush3.bf16.xpose.msk.msra.mxu0 %vm5070_vm2, %v4574_v15  ;;  %4374 = vmatprep.mubr.msk.f32.mxu0 %vm378_vm1, %v2776_v23  ;;  %v4901_v56 = vpop.eup %4900  ;;  %v4592_v59 = vpack.c.bf16 %v4787_v38, %v4786_v14 }
 0x862   : > { %4588 = vmatprep.subr.msk.bf16.mxu0 %vm5070_vm2, %v4586_v63  ;;  %v2958_v16 = vpop.permute.xlu0 %2957  ;;  %v2423_v23 = vmul.f32 %v4901_v56, %v5457_v2 }
 0x866   : > { %v3049_v22 = vpop.permute.xlu0 %3048 }
 0x868   : > { %4375 = vmatmul.mubr.msk.f32.vlgmr.msra.gmra.mrb[26].mxu0 %vm378_vm1, %v2778_v62 }
 0x869   : > { %4591 = vmatpush3.bf16.xpose.msk.msra.mxu0 %vm5070_vm2, %v4586_v63  ;;  %4388 = vmatprep.mubr.msk.f32.mxu0 %vm378_vm1, %v2958_v16 }
 0x883   : > { %v2404_v51 = vpop.xlane.xlu1 %2403 }
 0x884   : > { %4902 = vrcp.f32 %v2404_v51 }
 0x887   : > { %v2869_v44 = vpop.permute.xlu1 %2868 }
 0x88b   : > { %v2960_v26 = vpop.permute.xlu1 %2959 }
 0x88c   : > { %4389 = vmatmul.mubr.msk.f32.vlgmr.msra.gmra.mrb[28].mxu0 %vm378_vm1, %v2960_v26 }
 0x88e   : > { %v4903_v47 = vpop.eup %4902 }
 0x88f   : > { %v2422_v17 = vmul.f32 %v4903_v47, %v5472_v61  ;;  %v3051_v2 = vpop.permute.xlu1 %3050 }
 0x891   : > { %4367 = vmatprep.mubr.msk.f32.mxu1 %vm729_vm3, %v2422_v17 }
 0x892   : > { %4368 = vmatmul.mubr.msk.f32.vlgmr.msra.gmra.mrb[28].mxu1 %vm729_vm3, %v2423_v23 }
 0x893   : > { %4585 = vmatpush3.bf16.xpose.msk.msra.mxu1 %vm5070_vm2, %v4580_v48  ;;  %4381 = vmatprep.mubr.msk.f32.mxu1 %vm378_vm1, %v2867_v27 }
 0x894   : > { %4594 = vmatprep.subr.msk.bf16.mxu1 %vm5070_vm2, %v4592_v59 }
 0x89a   : > { %4382 = vmatmul.mubr.msk.f32.vlgmr.msra.gmra.mrb[30].mxu1 %vm378_vm1, %v2869_v44 }
 0x89b   : > { %4597 = vmatpush3.bf16.xpose.msk.msra.mxu1 %vm5070_vm2, %v4592_v59  ;;  %4395 = vmatprep.mubr.msk.f32.mxu1 %vm378_vm1, %v3049_v22 }
 0x8a2   : > { %4396 = vmatmul.mubr.msk.f32.vlgmr.msra.gmra.mrb[32].mxu1 %vm378_vm1, %v3051_v2 }
 0x8fa   : > { %v5524_v61 = vpop.f32.mrb[22].mxu0 }
 0x8fb   : > { %v5526_v3 = vpop.f32.mrb[23].mxu0 }
 0x930   : > { %v5528_v53 = vpop.f32.mrb[26].mxu1 }
 0x931   : > { %v5530_v0 = vpop.f32.mrb[27].mxu1 }
 0x933   : > { %v5532_v5 = vpop.f32.mrb[24].mxu0 }
 0x934   : > { %v5534_v6 = vpop.f32.mrb[25].mxu0 }
 0x93b   : > { %v4376_v15 = vpop.f32.mrb[26].mxu0 }
 0x93c   : > { %v2863_v20 = vadd.f32 %v4376_v15, %v3994_v32  ;;  %v2857_v7 = vpop.f32.mrb[27].mxu0 }
 0x93d   : > { %v2858_v58 = vadd.f32 %v3993_v21, %v2857_v7 }
 0x93e   : > { %v3142_v4 = vsel %vm729_vm3, %v2863_v20, -inf }
 0x93f   : > { %3143 = vmax.xlane.f32.xlu1 %v3142_v4  ;;  %v3139_v29 = vsel %vm729_vm3, %v2858_v58, -inf }
 0x940   : > { %3140 = vmax.xlane.f32.xlu0 %v3139_v29 }
 0x95f   : > { %v4390_v28 = vpop.f32.mrb[28].mxu0 }
 0x960   : > { %v3039_v13 = vpop.f32.mrb[29].mxu0  ;;  %v3045_v43 = vadd.f32 %v4390_v28, %v3994_v32 }
 0x961   : > { %v3040_v60 = vadd.f32 %v3993_v21, %v3039_v13 }
 0x962   : > { %v3154_v51 = vsel %vm729_vm3, %v3045_v43, -inf }
 0x963   : > { %v3151_v54 = vsel %vm729_vm3, %v3040_v60, -inf }
 0x964   : > { %3152 = vmax.xlane.f32.xlu1 %v3151_v54 }
 0x965   : > { %v5545_v49 = vpop.f32.mrb[28].mxu1 }
 0x966   : > { %v5547_v50 = vpop.f32.mrb[29].mxu1 }
 0x96d   : > { %v4383_v57 = vpop.f32.mrb[30].mxu1 }
 0x96e   : > { %v2948_v39 = vpop.f32.mrb[31].mxu1  ;;  %v2954_v42 = vadd.f32 %v4383_v57, %v3994_v32 }
 0x96f   : > { %v2949_v1 = vadd.f32 %v3993_v21, %v2948_v39 }
 0x970   : > { %v3148_v52 = vsel %vm729_vm3, %v2954_v42, -inf }
 0x971   : > { %v3145_v62 = vsel %vm729_vm3, %v2949_v1, -inf }
 0x972   : > { %3146 = vmax.xlane.f32.xlu0 %v3145_v62 }
 0x975   : > { %v4397_v48 = vpop.f32.mrb[32].mxu1 }
 0x976   : > { %v3130_v63 = vpop.f32.mrb[33].mxu1  ;;  %3149 = vmax.xlane.f32.xlu0 %v3148_v52  ;;  %v3136_v16 = vadd.f32 %v4397_v48, %v3994_v32 }
 0x977   : > { %v5551_v27 = vadd.f32 %v3993_v21, %v3130_v63 }
 0x978   : > { %v3160_v44 = vsel %vm729_vm3, %v3136_v16, -inf }
 0x979   : > { %v3157_v46 = vsel %vm729_vm3, %v5551_v27, -inf }
 0x97a   : > { %3158 = vmax.xlane.f32.xlu1 %v3157_v46  ;;  %3155 = vmax.xlane.f32.xlu0 %v3154_v51 }
 0x97e   : > { %3161 = vmax.xlane.f32.xlu0 %v3160_v44 }
 0x98b   : > { %4789 = vrot.lane.b32.xlu1 %v5040_v19, %s4954_s12 }
 0x9cc   : > { %v3144_v26 = vpop.xlane.xlu1 %3143 }
 0x9cd   : > { %v3164_v56 = vsub.f32 %v2863_v20, %v3144_v26  ;;  %v3141_v47 = vpop.xlane.xlu0 %3140 }
 0x9ce   : > { %v3163_v38 = vsub.f32 %v2858_v58, %v3141_v47 }
 0x9cf   : > { %v3173_v14 = vmul.f32 1.442695, %v3164_v56 }
 0x9d0   : > { %v3171_v17 = vmul.f32 1.442695, %v3163_v38 }
 0x9d1   : > { %4904 = vpow2.f32 %v3173_v14 }
 0x9d2   : > { %4906 = vpow2.f32 %v3171_v17 }
 0x9db   : > { %v5559_v23 = vpop.eup %4904 }
 0x9dc   : > { %v5561_v59 = vpop.eup %4906  ;;  %v3190_v22 = vsel %vm729_vm3, %v5559_v23, 0.0 }
 0x9dd   : > { %3191 = vadd.xlane.f32.xlu0 %v3190_v22  ;;  %v3187_v2 = vsel %vm729_vm3, %v5561_v59, 0.0 }
 0x9de   : > { %3188 = vadd.xlane.f32.xlu1 %v3187_v2 }
 0x9f1   : > { %v3153_v19 = vpop.xlane.xlu1 %3152 }
 0x9f2   : > { %v3167_v32 = vsub.f32 %v3040_v60, %v3153_v19 }
 0x9f4   : > { %v3179_v20 = vmul.f32 1.442695, %v3167_v32 }
 0x9ff   : > { %v3147_v21 = vpop.xlane.xlu0 %3146 }
 0xa00   : > { %v3165_v15 = vsub.f32 %v2949_v1, %v3147_v21 }
 0xa02   : > { %v3175_v7 = vmul.f32 1.442695, %v3165_v15 }
 0xa03   : > { %v3150_v58 = vpop.xlane.xlu0 %3149 }
 0xa04   : > { %4908 = vpow2.f32 %v3175_v7  ;;  %v3166_v4 = vsub.f32 %v2954_v42, %v3150_v58 }
 0xa05   : > { %4910 = vpow2.f32 %v3179_v20 }
 0xa06   : > { %v3177_v29 = vmul.f32 1.442695, %v3166_v4 }
 0xa07   : > { %v3159_v28 = vpop.xlane.xlu1 %3158  ;;  %v3156_v13 = vpop.xlane.xlu0 %3155 }
 0xa08   : > { %4912 = vpow2.f32 %v3177_v29  ;;  %v3168_v54 = vsub.f32 %v3045_v43, %v3156_v13  ;;  %v3169_v14 = vsub.f32 %v5551_v27, %v3159_v28 }
 0xa0a   : > { %v3181_v57 = vmul.f32 1.442695, %v3168_v54  ;;  %v3183_v17 = vmul.f32 1.442695, %v3169_v14 }
 0xa0b   : > { %v4790_v39 = vpop.permute.xlu1 %4789  ;;  %v3162_v62 = vpop.xlane.xlu0 %3161 }
 0xa0c   : > { %v4792_v48 = vunpack.i.h.bf16 %v4790_v39  ;;  %v4791_v52 = vunpack.i.l.bf16 %v4790_v39  ;;  %v3170_v63 = vsub.f32 %v3136_v16, %v3162_v62  ;;  %4914 = vpow2.f32 %v3181_v57 }
 0xa0e   : > { %v5567_v60 = vpop.eup %4908  ;;  %v4598_v1 = vpack.c.bf16 %v4792_v48, %v4791_v52  ;;  %v3185_v46 = vmul.f32 1.442695, %v3170_v63 }
 0xa0f   : > { %v3193_v42 = vsel %vm729_vm3, %v5567_v60, 0.0  ;;  %v5571_v51 = vpop.eup %4910 }
 0xa10   : > { %4916 = vpow2.f32 %v3185_v46  ;;  %4599 = vmatprep.subr.bf16.mxu0 %v4598_v1  ;;  %3194 = vadd.xlane.f32.xlu1 %v3193_v42  ;;  %v3199_v44 = vsel %vm729_vm3, %v5571_v51, 0.0 }
 0xa11   : > { %4601 = vmatpush3.bf16.msra.mxu0 %v4598_v1  ;;  %4918 = vpow2.f32 %v3183_v17 }
 0xa12   : > { %v5573_v43 = vpop.eup %4912 }
 0xa13   : > { %v3196_v16 = vsel %vm729_vm3, %v5573_v43, 0.0 }
 0xa14   : > { %3200 = vadd.xlane.f32.xlu1 %v3199_v44  ;;  %3197 = vadd.xlane.f32.xlu0 %v3196_v16 }
 0xa16   : > { %v5579_v26 = vpop.eup %4914 }
 0xa17   : > { %v3202_v56 = vsel %vm729_vm3, %v5579_v26, 0.0 }
 0xa18   : > { %3203 = vadd.xlane.f32.xlu0 %v3202_v56 }
 0xa1a   : > { %v5583_v47 = vpop.eup %4916 }
 0xa1b   : > { %v3208_v38 = vsel %vm729_vm3, %v5583_v47, 0.0  ;;  %v5596_v22 = vpop.eup %4918 }
 0xa1c   : > { %3209 = vadd.xlane.f32.xlu0 %v3208_v38 }
 0xa25   : > { %4799 = vrot.lane.b32.xlu1 %v5036_v18, %s4954_s12  ;;  %v3205_v18 = vsel %vm729_vm3, %v5596_v22, 0.0 }
 0xa32   : > { %4794 = vrot.lane.b32.xlu0 %v5060_v25, %s4954_s12 }
 0xa36   : > { %3583 = vrot.lane.b32.xlu0 %v5376_v30, %s4955_s13 }
 0xa3a   : > { %3615 = vrot.lane.b32.xlu0 %v5526_v3, %s4956_s14 }
 0xa3e   : > { %3587 = vrot.lane.b32.xlu0 %v5380_v33, %s4955_s13 }
 0xa42   : > { %3619 = vrot.lane.b32.xlu0 %v5530_v0, %s4956_s14 }
 0xa46   : > { %3591 = vrot.lane.b32.xlu0 %v5384_v37, %s4955_s13 }
 0xa49   : > { %3206 = vadd.xlane.f32.xlu1 %v3205_v18 }
 0xa4a   : > { %3623 = vrot.lane.b32.xlu0 %v5534_v6, %s4956_s14 }
 0xa4e   : > { %3595 = vrot.lane.b32.xlu0 %v5400_v55, %s4955_s13 }
 0xa52   : > { %3627 = vrot.lane.b32.xlu0 %v5547_v50, %s4956_s14 }
 0xa5a   : > { %4804 = vrot.lane.b32.xlu1 %v5056_v24, %s4954_s12 }
 0xa5e   : > { %3585 = vrot.lane.b32.xlu1 %v5374_v8, %s4955_s13 }
 0xa62   : > { %3617 = vrot.lane.b32.xlu1 %v5524_v61, %s4956_s14 }
 0xa66   : > { %3589 = vrot.lane.b32.xlu1 %v5378_v31, %s4955_s13 }
 0xa6a   : > { %3621 = vrot.lane.b32.xlu1 %v5528_v53, %s4956_s14  ;;  %v3192_v25 = vpop.xlane.xlu0 %3191 }
 0xa6b   : > { %4920 = vrcp.f32 %v3192_v25  ;;  %v3189_v30 = vpop.xlane.xlu1 %3188 }
 0xa6c   : > { %4922 = vrcp.f32 %v3189_v30  ;;  %v3696_v30 = vld [vmem:[%s5719_s3] sm:$0xff] }
 0xa6e   : > { %3593 = vrot.lane.b32.xlu1 %v5382_v36, %s4955_s13 }
 0xa72   : > { %3625 = vrot.lane.b32.xlu1 %v5532_v5, %s4956_s14 }
 0xa75   : > { %v4921_v33 = vpop.eup %4920 }
 0xa76   : > { %v4923_v37 = vpop.eup %4922  ;;  %3597 = vrot.lane.b32.xlu1 %v5398_v45, %s4955_s13  ;;  %v3220_v8 = vmul.f32 %v4921_v33, %v5559_v23 }
 0xa77   : > { %v3219_v24 = vmul.f32 %v4923_v37, %v5561_v59  ;;  %v3699_v37 = vld [vmem:[%s5719_s3 + $0x18] sm:$0xff] }
 0xa79   : > { %4402 = vmatprep.mubr.msk.f32.mxu0 %vm729_vm3, %v3219_v24 }
 0xa7a   : > { %3629 = vrot.lane.b32.xlu1 %v5545_v49, %s4956_s14  ;;  %4403 = vmatmul.mubr.msk.f32.vlgmr.msra.gmra.mrb[30].mxu0 %vm729_vm3, %v3220_v8 }
 0xa9d   : > { %v3195_v31 = vpop.xlane.xlu1 %3194 }
 0xa9e   : > { %4924 = vrcp.f32 %v3195_v31 }
 0xaa1   : > { %v3201_v55 = vpop.xlane.xlu1 %3200  ;;  %v3198_v36 = vpop.xlane.xlu0 %3197 }
 0xaa2   : > { %4926 = vrcp.f32 %v3201_v55 }
 0xaa5   : > { %v4800_v61 = vpop.permute.xlu1 %4799  ;;  %v3204_v0 = vpop.xlane.xlu0 %3203 }
 0xaa6   : > { %v4802_v3 = vunpack.i.h.bf16 %v4800_v61  ;;  %v4801_v53 = vunpack.i.l.bf16 %v4800_v61  ;;  %4928 = vrcp.f32 %v3204_v0 }
 0xaa7   : > { %4930 = vrcp.f32 %v3198_v36 }
 0xaa8   : > { %v4925_v45 = vpop.eup %4924  ;;  %v4606_v5 = vpack.c.bf16 %v4802_v3, %v4801_v53 }
 0xaa9   : > { %v3221_v6 = vmul.f32 %v4925_v45, %v5567_v60  ;;  %v3210_v50 = vpop.xlane.xlu0 %3209 }
 0xaaa   : > { %4607 = vmatprep.subr.bf16.mxu0 %v4606_v5  ;;  %4932 = vrcp.f32 %v3210_v50 }
 0xaab   : > { %4409 = vmatprep.mubr.msk.f32.mxu1 %vm729_vm3, %v3221_v6  ;;  %4609 = vmatpush3.bf16.msra.mxu0 %v4606_v5 }
 0xaac   : > { %v4927_v49 = vpop.eup %4926 }
 0xaad   : > { %v3223_v27 = vmul.f32 %v4927_v49, %v5571_v51  ;;  %v4795_v23 = vpop.permute.xlu0 %4794 }
 0xaae   : > { %v4797_v59 = vunpack.i.h.bf16 %v4795_v23  ;;  %v4796_v2 = vunpack.i.l.bf16 %v4795_v23 }
 0xaaf   : > { %4416 = vmatprep.mubr.msk.f32.mxu0 %vm729_vm3, %v3223_v27 }
 0xab0   : > { %v4929_v19 = vpop.eup %4928  ;;  %v4602_v32 = vpack.c.bf16 %v4797_v59, %v4796_v2 }
 0xab1   : > { %v4931_v21 = vpop.eup %4930  ;;  %v3224_v15 = vmul.f32 %v4929_v19, %v5579_v26  ;;  %v5623_v20 = vpop.permute.xlu0 %3583 }
 0xab2   : > { %4603 = vmatprep.subr.bf16.mxu1 %v4602_v32  ;;  %v3222_v7 = vmul.f32 %v4931_v21, %v5573_v43  ;;  %v3671_v5 = vsel %vm378_vm1, %v5226_v10, %v5623_v20 }
 0xab3   : > { %4605 = vmatpush3.bf16.msra.mxu1 %v4602_v32  ;;  %4417 = vmatmul.mubr.msk.f32.vlgmr.msra.gmra.mrb[32].mxu0 %vm729_vm3, %v3224_v15 }
 0xab4   : > { %v4933_v51 = vpop.eup %4932 }
 0xab5   : > { %v5627_v58 = vpop.permute.xlu0 %3615  ;;  %v3226_v16 = vmul.f32 %v4933_v51, %v5583_v47 }
 0xab6   : > { %4410 = vmatmul.mubr.msk.f32.vlgmr.msra.gmra.mrb[34].mxu1 %vm729_vm3, %v3222_v7  ;;  %v3679_v50 = vsel %vm729_vm3, %v3671_v5, %v5627_v58 }
 0xab9   : > { %v3588_v4 = vpop.permute.xlu0 %3587 }
 0xaba   : > { %v3673_v29 = vsel %vm378_vm1, %v5242_v35, %v3588_v4 }
 0xabd   : > { %v3620_v28 = vpop.permute.xlu0 %3619 }
 0xabe   : > { %v5633_v13 = vsel %vm729_vm3, %v3673_v29, %v3620_v28 }
 0xac1   : > { %v3592_v54 = vpop.permute.xlu0 %3591 }
 0xac2   : > { %v3675_v57 = vsel %vm378_vm1, %v5230_v12, %v3592_v54 }
 0xac5   : > { %v3624_v39 = vpop.permute.xlu0 %3623 }
 0xac6   : > { %v5638_v62 = vsel %vm729_vm3, %v3675_v57, %v3624_v39  ;;  %v4019_v57 = vld [vmem:[%s5720_s4] ss:$0 sm:$0xff] }
 0xac9   : > { %v3596_v48 = vpop.permute.xlu0 %3595 }
 0xaca   : > { %v5642_v52 = vsel %vm378_vm1, %v5250_v41, %v3596_v48 }
 0xacd   : > { %v3628_v45 = vpop.permute.xlu0 %3627 }
 0xace   : > { %v3685_v4 = vsel %vm729_vm3, %v5642_v52, %v3628_v45 }
 0xad6   : > { %v3207_v63 = vpop.xlane.xlu1 %3206 }
 0xad7   : > { %4934 = vrcp.f32 %v3207_v63 }
 0xada   : > { %v4805_v35 = vpop.permute.xlu1 %4804 }
 0xadb   : > { %v4807_v60 = vunpack.i.h.bf16 %v4805_v35  ;;  %v4806_v1 = vunpack.i.l.bf16 %v4805_v35 }
 0xadd   : > { %v4610_v46 = vpack.c.bf16 %v4807_v60, %v4806_v1 }
 0xade   : > { %v3586_v42 = vpop.permute.xlu1 %3585 }
 0xadf   : > { %4611 = vmatprep.subr.bf16.mxu1 %v4610_v46  ;;  %v3672_v49 = vsel %vm378_vm1, %v5224_v9, %v3586_v42 }
 0xae0   : > { %4613 = vmatpush3.bf16.msra.mxu1 %v4610_v46 }
 0xae1   : > { %v4935_v12 = vpop.eup %4934 }
 0xae2   : > { %v3618_v43 = vpop.permute.xlu1 %3617  ;;  %v3225_v44 = vmul.f32 %v4935_v12, %v5596_v22 }
 0xae3   : > { %v3680_v23 = vsel %vm729_vm3, %v3672_v49, %v3618_v43 }
 0xae4   : > { %4423 = vmatprep.mubr.msk.f32.mxu1 %vm729_vm3, %v3225_v44 }
 0xae5   : > { %4424 = vmatmul.mubr.msk.f32.vlgmr.msra.gmra.mrb[36].mxu1 %vm729_vm3, %v3226_v16 }
 0xae6   : > { %v3590_v41 = vpop.permute.xlu1 %3589 }
 0xae7   : > { %v3674_v26 = vsel %vm378_vm1, %v5240_v34, %v3590_v41  ;;  %v3697_v34 = vld [vmem:[%s5719_s3 + $0x8] sm:$0xff] }
 0xae8   : > { %v4614_v33 = vpack.c.bf16 %v3697_v34, %v3696_v30 }
 0xaea   : > { %v3622_v56 = vpop.permute.xlu1 %3621  ;;  %4615 = vmatprep.subr.bf16.mxu0 %v4614_v33 }
 0xaeb   : > { %v3682_v38 = vsel %vm729_vm3, %v3674_v26, %v3622_v56  ;;  %4617 = vmatpush3.bf16.msra.mxu0 %v4614_v33 }
 0xaee   : > { %v3594_v14 = vpop.permute.xlu1 %3593 }
 0xaef   : > { %v3676_v17 = vsel %vm378_vm1, %v5228_v11, %v3594_v14  ;;  %v3698_v11 = vld [vmem:[%s5719_s3 + $0x10] sm:$0xff] }
 0xaf2   : > { %v3626_v18 = vpop.permute.xlu1 %3625 }
 0xaf3   : > { %v3684_v22 = vsel %vm729_vm3, %v3676_v17, %v3626_v18 }
 0xaf6   : > { %v3598_v25 = vpop.permute.xlu1 %3597 }
 0xaf7   : > { %v3678_v47 = vsel %vm378_vm1, %v5248_v40, %v3598_v25  ;;  %v4618_v40 = vpack.c.bf16 %v3699_v37, %v3698_v11 }
 0xaf9   : > { %4619 = vmatprep.subr.bf16.mxu0 %v4618_v40 }
 0xafa   : > { %4621 = vmatpush3.bf16.msra.mxu0 %v4618_v40  ;;  %v3630_v0 = vpop.permute.xlu1 %3629 }
 0xafb   : > { %v3686_v28 = vsel %vm729_vm3, %v3678_v47, %v3630_v0 }
 0xb4d   : > { %v4404_v24 = vpop.f32.mrb[30].mxu0 }
 0xb4e   : > { %3649 = vrot.lane.b32.xlu1 %v4404_v24, %s4957_s24  ;;  %v3305_v8 = vpop.f32.mrb[31].mxu0 }
 0xb4f   : > { %3647 = vrot.lane.b32.xlu0 %v3305_v8, %s4957_s24 }
 0xb86   : > { %v4418_v31 = vpop.f32.mrb[32].mxu0 }
 0xb87   : > { %v3479_v55 = vpop.f32.mrb[33].mxu0 }
 0xb89   : > { %v4411_v36 = vpop.f32.mrb[34].mxu1 }
 0xb8a   : > { %3653 = vrot.lane.b32.xlu1 %v4411_v36, %s4957_s24  ;;  %v3392_v61 = vpop.f32.mrb[35].mxu1 }
 0xb8b   : > { %3651 = vrot.lane.b32.xlu0 %v3392_v61, %s4957_s24 }
 0xb8e   : > { %3657 = vrot.lane.b32.xlu1 %v4418_v31, %s4957_s24 }
 0xb8f   : > { %3655 = vrot.lane.b32.xlu0 %v3479_v55, %s4957_s24 }
 0xbb8   : > { %v4425_v3 = vpop.f32.mrb[36].mxu1 }
 0xbb9   : > { %3661 = vrot.lane.b32.xlu1 %v4425_v3, %s4957_s24  ;;  %v3566_v53 = vpop.f32.mrb[37].mxu1 }
 0xbba   : > { %3659 = vrot.lane.b32.xlu0 %v3566_v53, %s4957_s24 }
 0xbc0   : > { %v3650_v6 = vpop.permute.xlu1 %3649 }
 0xbc1   : > { %v3648_v27 = vpop.permute.xlu0 %3647  ;;  %v3689_v2 = vsel %vm3687_vm4, %v3680_v23, %v3650_v6 }
 0xbc2   : > { %v3688_v59 = vsel %vm3687_vm4, %v3679_v50, %v3648_v27 }
 0xbc3   : > { %4434 = vmatprep.mubr.msk.f32.mxu0 %vm240_vm0, %v3688_v59 }
 0xbc4   : > { %4435 = vmatmul.mubr.msk.f32.vlgmr.msra.gmra.mrb[34].mxu0 %vm240_vm0, %v3689_v2 }
 0xbfc   : > { %v3654_v19 = vpop.permute.xlu1 %3653 }
 0xbfd   : > { %v3652_v10 = vpop.permute.xlu0 %3651  ;;  %v3691_v21 = vsel %vm3687_vm4, %v3682_v38, %v3654_v19 }
 0xbfe   : > { %v3690_v32 = vsel %vm3687_vm4, %v5633_v13, %v3652_v10 }
 0xbff   : > { %4437 = vmatprep.mubr.msk.f32.mxu0 %vm240_vm0, %v3690_v32 }
 0xc00   : > { %v3658_v9 = vpop.permute.xlu1 %3657  ;;  %4438 = vmatmul.mubr.msk.f32.gmra.mrb[36].mxu0 %vm240_vm0, %v3691_v21 }
 0xc01   : > { %v3656_v15 = vpop.permute.xlu0 %3655  ;;  %v3693_v7 = vsel %vm3687_vm4, %v3684_v22, %v3658_v9 }
 0xc02   : > { %v3692_v20 = vsel %vm3687_vm4, %v5638_v62, %v3656_v15 }
 0xc03   : > { %4440 = vmatprep.mubr.msk.f32.mxu0 %vm240_vm0, %v3692_v20 }
 0xc04   : > { %4441 = vmatmul.mubr.msk.f32.gmra.mrb[38].mxu0 %vm240_vm0, %v3693_v7 }
 0xc2b   : > { %v3662_v58 = vpop.permute.xlu1 %3661 }
 0xc2c   : > { %v3660_v29 = vpop.permute.xlu0 %3659  ;;  %v3695_v54 = vsel %vm3687_vm4, %v3686_v28, %v3662_v58 }
 0xc2d   : > { %v3694_v13 = vsel %vm3687_vm4, %v3685_v4, %v3660_v29 }
 0xc2e   : > { %4443 = vmatprep.mubr.msk.f32.mxu0 %vm240_vm0, %v3694_v13 }
 0xc2f   : > { %4444 = vmatmul.mubr.msk.f32.gmra.mrb[40].mxu0 %vm240_vm0, %v3695_v54 }
 0xc97   : > { %v4436_v39 = vpop.f32.mrb[34].mxu0 }
 0xc98   : > { %v3803_v62 = vadd.f32 %v4436_v39, %v4019_v57  ;;  %v3797_v48 = vpop.f32.mrb[35].mxu0 }
 0xc99   : > { %v3798_v52 = vadd.f32 %v4019_v57, %v3797_v48 }
 0xc9a   : > { %3837 = vst.msk [vmem:[%s226_s6 + $0x8] sm:$0xff] %vm240_vm0, %v3803_v62 }
 0xc9b   : > { %3836 = vst.msk [vmem:[%s226_s6] sm:$0xff] %vm240_vm0, %v3798_v52 }
 0xcd3   : > { %v4439_v63 = vpop.f32.mrb[36].mxu0 }
 0xcd4   : > { %v3813_v35 = vadd.f32 %v4439_v63, %v4019_v57  ;;  %v3807_v60 = vpop.f32.mrb[37].mxu0 }
 0xcd5   : > { %v3808_v1 = vadd.f32 %v4019_v57, %v3807_v60 }
 0xcd6   : > { %3839 = vst.msk [vmem:[%s226_s6 + $0x18] sm:$0xff] %vm240_vm0, %v3813_v35 }
 0xcd7   : > { %3838 = vst.msk [vmem:[%s226_s6 + $0x10] sm:$0xff] %vm240_vm0, %v3808_v1  ;;  %v4442_v46 = vpop.f32.mrb[38].mxu0 }
 0xcd8   : > { %v3823_v42 = vadd.f32 %v4442_v46, %v4019_v57  ;;  %v3817_v51 = vpop.f32.mrb[39].mxu0 }
 0xcd9   : > { %v3818_v12 = vadd.f32 %v4019_v57, %v3817_v51 }
 0xcda   : > { %3841 = vst.msk [vmem:[%s226_s6 + $0x28] sm:$0xff] %vm240_vm0, %v3823_v42 }
 0xcdb   : > { %3840 = vst.msk [vmem:[%s226_s6 + $0x20] sm:$0xff] %vm240_vm0, %v3818_v12 }
 0xd02   : > { %v4445_v43 = vpop.f32.mrb[40].mxu0 }
 0xd03   : > { %v3833_v44 = vadd.f32 %v4445_v43, %v4019_v57  ;;  %v3827_v16 = vpop.f32.mrb[41].mxu0 }
 0xd04   : > { %v3828_v41 = vadd.f32 %v4019_v57, %v3827_v16 }
 0xd05   : > { %3843 = vst.msk [vmem:[%s226_s6 + $0x38] sm:$0xff] %vm240_vm0, %v3833_v44 }
 0xd06   : > { %3842 = vst.msk [vmem:[%s226_s6 + $0x30] sm:$0xff] %vm240_vm0, %v3828_v41 }
 0xd07 PF: > { %s15_s18 = sadd.s32 1, %s4942_s18  }
 0xd08   : > { %p12_p4 = scmp.ge.s32.totalorder %s15_s18, 4  }
 0xd0a   :  { %14 = sbr.rel (!%p12_p4) target bundleno = 1 (0x1), region = 73 }

</bundles_post_ra>
